<compile_context>
chip_gen: v7x
topology: tpu7x:2x2x1
jax: 0.10.0
libtpu: 0.0.40
codegen_flags: <defaults>
</compile_context>

<pallas_src>
import functools
import math

import jax
import jax.numpy as jnp
from jax import lax
from jax.experimental import pallas as pl
from jax.experimental.pallas import tpu as pltpu


# ------------------------------ fused kernel --------------------------------


def _fused_kernel(patches_ref, w1_ref, b1_ref, w2_ref, b2_ref,
                  wqk_ref, bqk_ref, wvo_ref, battn_ref,
                  rw1_ref, rb1_ref, rw2_ref, rb2_ref, out_ref,
                  *, n_heads, n_examples, n_pad):
    # --- feature extractor: conv1 (im2col) + ReLU + MaxPool2d(2) + conv2 ----
    # patches_ref: (1, 8*n_pad, C*9); row = pos*(2*n_pad) + io*n_pad + example.
    pat = patches_ref[0]                                            # (8*n_pad, C*9)
    h = jnp.dot(pat, w1_ref[...], preferred_element_type=jnp.float32)
    h = jnp.maximum(h + b1_ref[...], 0.0)                           # (8*n_pad, 64)
    blk = 2 * n_pad                                                  # aligned (mult of 8)
    pooled = jnp.maximum(jnp.maximum(h[0:blk], h[blk:2 * blk]),
                         jnp.maximum(h[2 * blk:3 * blk], h[3 * blk:4 * blk]))
    # conv2 on a 1x1 spatial input with pad=1 only sees its center tap.
    f = jnp.dot(pooled, w2_ref[...], preferred_element_type=jnp.float32)
    f = jnp.maximum(f + b2_ref[...], 0.0)                           # (2*n_pad, F)
    fdim = f.shape[-1]
    inp = f[0:n_examples]                                            # (N, F) "input" feats
    x = f[n_pad:n_pad + n_examples]                                  # (N, F) "output" feats

    # --- self-attention on the "output" features (1/sqrt(d) pre-folded) -----
    qk = jnp.dot(x, wqk_ref[...], preferred_element_type=jnp.float32) + bqk_ref[...]
    q = qk[:, :fdim]                                                 # already scaled
    k = qk[:, fdim:]
    # vo[:, h*F:(h+1)*F] = (x @ Wv_h) @ Wo_h   -- per-head V+out-proj, lane dense.
    vo = jnp.dot(x, wvo_ref[...], preferred_element_type=jnp.float32)   # (N, H*F)

    d = fdim // n_heads
    attn = jnp.zeros((n_examples, fdim), jnp.float32)
    for hi in range(n_heads):
        lo = hi * d
        s = lax.dot_general(q[:, lo:lo + d], k[:, lo:lo + d],
                            (((1,), (1,)), ((), ())),
                            preferred_element_type=jnp.float32)     # (N, N)
        s = s - jnp.max(s, axis=-1, keepdims=True)
        p = jnp.exp(s)
        p = p * pl.reciprocal(jnp.sum(p, axis=-1, keepdims=True), approx=True)
        attn = attn + jnp.dot(p, vo[:, hi * fdim:(hi + 1) * fdim],
                              preferred_element_type=jnp.float32)
    rule = attn + battn_ref[...]                                     # + (bv @ Wo + bo)

    # --- rule applicator: Linear + ReLU, mean over examples, final Linear ---
    z = inp + rule
    h1 = jnp.maximum(
        jnp.dot(z, rw1_ref[...], preferred_element_type=jnp.float32) + rb1_ref[...],
        0.0)                                                         # (N, F)
    h1m = jnp.sum(h1, axis=0, keepdims=True) * (1.0 / n_examples)    # mean hoisted (W2 linear)
    final = jnp.dot(h1m, rw2_ref[...], preferred_element_type=jnp.float32) + rb2_ref[...]
    out_ref[0] = final.astype(out_ref.dtype)                         # (1, Cout)


# ------------------------------ wrapper --------------------------------------


def _extract_patches(input_pairs, n_pad):
    # (B, N, 2, C, 2, 2) -> (B, 8*n_pad, C*9)  im2col for the 3x3 / pad=1 conv.
    # Rows ordered [pool-position, io, example] so the kernel's pooling and the
    # io split are aligned sublane row-block ops.  Pure layout plumbing.
    b, n, io, c, hh, ww = input_pairs.shape
    xp = jnp.pad(input_pairs, ((0, 0),) * 4 + ((1, 1), (1, 1)))
    pats = []
    for i in range(hh):
        for j in range(ww):
            pats.append(xp[..., i:i + 3, j:j + 3].reshape(b, n, io, c * 9))
    p = jnp.stack(pats, axis=0)                  # (4, B, N, 2, C*9)
    p = p.transpose(1, 0, 3, 2, 4)               # (B, 4, 2, N, C*9)
    if n_pad > n:
        p = jnp.pad(p, ((0, 0), (0, 0), (0, 0), (0, n_pad - n), (0, 0)))
    return p.reshape(b, 4 * io * n_pad, c * 9)


@functools.partial(jax.jit, static_argnames=("n_heads",))
def rule_inference_forward(input_pairs, params, *, n_heads=8):
    b, n, io, c, hh, ww = input_pairs.shape
    # TODO(synk): specialized to h=w=2 — the only spatial size for which the
    # PyTorch module's flattened conv features equal feature_dim (MHA embed dim).
    assert io == 2 and hh == 2 and ww == 2
    mid = params["conv1_w"].shape[0]             # 64
    fdim = params["conv2_w"].shape[0]
    cout = params["rule_w2"].shape[1]
    d = fdim // n_heads
    n_pad = ((n + 7) // 8) * 8
    k1 = c * 9

    patches = _extract_patches(input_pairs, n_pad)          # (B, 8*n_pad, C*9)

    # One-time weight transforms (wrapper side, not per-activation work).
    w1t = params["conv1_w"].reshape(mid, k1).T               # (C*9, 64)
    b1c = params["conv1_b"].reshape(1, mid)
    w2c = params["conv2_w"][:, :, 1, 1].T                    # (64, F) center tap
    b2c = params["conv2_b"].reshape(1, fdim)
    scale = 1.0 / math.sqrt(d)
    wqk = jnp.concatenate([params["wq"] * scale, params["wk"]], axis=1)       # (F, 2F)
    bqk = jnp.concatenate([params["bq"] * scale, params["bk"]]).reshape(1, 2 * fdim)
    # Wvo[:, h*F:(h+1)*F] = Wv[:, h*d:(h+1)*d] @ Wo[h*d:(h+1)*d, :]
    wvo = jnp.einsum("fhd,hdg->fhg",
                     params["wv"].reshape(fdim, n_heads, d),
                     params["wo"].reshape(n_heads, d, fdim)).reshape(fdim, n_heads * fdim)
    battn = (params["bv"] @ params["wo"] + params["bo"]).reshape(1, fdim)
    rb1 = params["rule_b1"].reshape(1, fdim)
    rb2 = params["rule_b2"].reshape(1, cout)

    kern = functools.partial(_fused_kernel, n_heads=n_heads,
                             n_examples=n, n_pad=n_pad)
    const = lambda i: (0, 0)
    out = pl.pallas_call(
        kern,
        out_shape=jax.ShapeDtypeStruct((b, 1, cout), jnp.float32),
        grid=(b,),
        in_specs=[
            pl.BlockSpec((1, 4 * io * n_pad, k1), lambda i: (i, 0, 0)),  # patches
            pl.BlockSpec((k1, mid), const),                              # conv1 W
            pl.BlockSpec((1, mid), const),
            pl.BlockSpec((mid, fdim), const),                            # conv2 W (center tap)
            pl.BlockSpec((1, fdim), const),
            pl.BlockSpec((fdim, 2 * fdim), const),                       # [Wq*scale | Wk]
            pl.BlockSpec((1, 2 * fdim), const),
            pl.BlockSpec((fdim, n_heads * fdim), const),                 # Wvo (per-head Wv@Wo)
            pl.BlockSpec((1, fdim), const),                              # bv@Wo + bo
            pl.BlockSpec((fdim, fdim), const),                           # rule W1
            pl.BlockSpec((1, fdim), const),
            pl.BlockSpec((fdim, cout), const),                           # rule W2
            pl.BlockSpec((1, cout), const),
        ],
        out_specs=pl.BlockSpec((1, 1, cout), lambda i: (i, 0, 0)),
        compiler_params=pltpu.CompilerParams(dimension_semantics=("parallel",)),
    )(patches, w1t, b1c, w2c, b2c, wqk, bqk, wvo, battn,
      params["rule_w1"], rb1, params["rule_w2"], rb2)
    return out[:, 0, :]


# ------------------------- params & pure-JAX reference ----------------------


def init_params(key, input_dim, feature_dim=128):
    ks = jax.random.split(key, 16)
    fdim, c = feature_dim, input_dim

    def u(k, shape, fan_in):
        lim = 1.0 / math.sqrt(fan_in)
        return jax.random.uniform(k, shape, jnp.float32, -lim, lim)

    return dict(
        conv1_w=u(ks[0], (64, c, 3, 3), c * 9), conv1_b=u(ks[1], (64,), c * 9),
        conv2_w=u(ks[2], (fdim, 64, 3, 3), 64 * 9), conv2_b=u(ks[3], (fdim,), 64 * 9),
        # attention / linear weights stored (in, out) so that  y = x @ W + b
        wq=u(ks[4], (fdim, fdim), fdim), bq=u(ks[5], (fdim,), fdim),
        wk=u(ks[6], (fdim, fdim), fdim), bk=u(ks[7], (fdim,), fdim),
        wv=u(ks[8], (fdim, fdim), fdim), bv=u(ks[9], (fdim,), fdim),
        wo=u(ks[10], (fdim, fdim), fdim), bo=u(ks[11], (fdim,), fdim),
        rule_w1=u(ks[12], (fdim, fdim), fdim), rule_b1=u(ks[13], (fdim,), fdim),
        rule_w2=u(ks[14], (fdim, c), fdim), rule_b2=u(ks[15], (c,), fdim),
    )


def ref_forward(input_pairs, params, *, n_heads=8):
    b, n, io, c, hh, ww = input_pairs.shape
    x = input_pairs.reshape(b * n * io, c, hh, ww)
    dn = ("NCHW", "OIHW", "NCHW")
    y = lax.conv_general_dilated(x, params["conv1_w"], (1, 1), "SAME",
                                 dimension_numbers=dn)
    y = jax.nn.relu(y + params["conv1_b"][None, :, None, None])
    y = lax.reduce_window(y, -jnp.inf, lax.max, (1, 1, 2, 2), (1, 1, 2, 2), "VALID")
    y = lax.conv_general_dilated(y, params["conv2_w"], (1, 1), "SAME",
                                 dimension_numbers=dn)
    y = jax.nn.relu(y + params["conv2_b"][None, :, None, None])
    fdim = params["conv2_w"].shape[0]
    feats = y.reshape(b, n, io, fdim)
    inp, outp = feats[:, :, 0, :], feats[:, :, 1, :]

    d = fdim // n_heads
    q = outp @ params["wq"] + params["bq"]
    k = outp @ params["wk"] + params["bk"]
    v = outp @ params["wv"] + params["bv"]

    def split(t):
        return t.reshape(b, n, n_heads, d).transpose(0, 2, 1, 3)

    qh, kh, vh = split(q), split(k), split(v)
    s = jnp.einsum("bhqd,bhkd->bhqk", qh, kh) / math.sqrt(d)
    a = jax.nn.softmax(s, axis=-1)
    o = jnp.einsum("bhqk,bhkd->bhqd", a, vh).transpose(0, 2, 1, 3).reshape(b, n, fdim)
    rule = o @ params["wo"] + params["bo"]

    z = inp + rule
    h1 = jax.nn.relu(z @ params["rule_w1"] + params["rule_b1"])
    applied = h1 @ params["rule_w2"] + params["rule_b2"]
    return applied.mean(axis=1)


# -------------------------------- main ---------------------------------------


if __name__ == "__main__":
    input_dim = 4            # channels
    feature_dim = 128
    n_heads = 8
    num_examples = 10
    batch = 2
    spatial = 2              # h = w = 2 (see TODO above)

    key = jax.random.PRNGKey(0)
    kx, kp = jax.random.split(key)
    input_pairs = jax.random.normal(
        kx, (batch, num_examples, 2, input_dim, spatial, spatial), dtype=jnp.float32)
    params = init_params(kp, input_dim, feature_dim)

    out = rule_inference_forward(input_pairs, params, n_heads=n_heads)
    out = jax.block_until_ready(out)

    ref = ref_forward(input_pairs, params, n_heads=n_heads)
    assert out.shape == (batch, input_dim)
    err = float(jnp.max(jnp.abs(out - ref)))
    # approx-reciprocal softmax + weight-fold reassociation -> slightly looser tol.
    assert jnp.allclose(out, ref, atol=1e-3, rtol=1e-3), err

    print("KERNEL_OK")
</pallas_src>

<mosaic_0001>
module attributes {stable_mosaic.version = 11 : i64} {
  func.func @_fused_kernel(%arg0: i32, %arg1: memref<1x128x36xf32, #tpu.memory_space<vmem>>, %arg2: memref<36x64xf32, #tpu.memory_space<vmem>>, %arg3: memref<1x64xf32, #tpu.memory_space<vmem>>, %arg4: memref<64x128xf32, #tpu.memory_space<vmem>>, %arg5: memref<1x128xf32, #tpu.memory_space<vmem>>, %arg6: memref<128x256xf32, #tpu.memory_space<vmem>>, %arg7: memref<1x256xf32, #tpu.memory_space<vmem>>, %arg8: memref<128x1024xf32, #tpu.memory_space<vmem>>, %arg9: memref<1x128xf32, #tpu.memory_space<vmem>>, %arg10: memref<128x128xf32, #tpu.memory_space<vmem>>, %arg11: memref<1x128xf32, #tpu.memory_space<vmem>>, %arg12: memref<128x4xf32, #tpu.memory_space<vmem>>, %arg13: memref<1x4xf32, #tpu.memory_space<vmem>>, %arg14: memref<1x1x4xf32, #tpu.memory_space<vmem>>) attributes {dimension_semantics = [#tpu.dimension_semantics<parallel>], iteration_bounds = array<i64: 2>, scalar_prefetch = 0 : i64, scratch_operands = 0 : i64, tpu.core_type = #tpu.core_type<tc>, window_params = [{transform_indices = @transform_0, window_bounds = array<i64: 1, 128, 36>}, {pipeline_mode = #tpu.pipeline_mode<synchronous>, transform_indices = @transform_1, window_bounds = array<i64: 36, 64>}, {pipeline_mode = #tpu.pipeline_mode<synchronous>, transform_indices = @transform_2, window_bounds = array<i64: 1, 64>}, {pipeline_mode = #tpu.pipeline_mode<synchronous>, transform_indices = @transform_3, window_bounds = array<i64: 64, 128>}, {pipeline_mode = #tpu.pipeline_mode<synchronous>, transform_indices = @transform_4, window_bounds = array<i64: 1, 128>}, {pipeline_mode = #tpu.pipeline_mode<synchronous>, transform_indices = @transform_5, window_bounds = array<i64: 128, 256>}, {pipeline_mode = #tpu.pipeline_mode<synchronous>, transform_indices = @transform_6, window_bounds = array<i64: 1, 256>}, {pipeline_mode = #tpu.pipeline_mode<synchronous>, transform_indices = @transform_7, window_bounds = array<i64: 128, 1024>}, {pipeline_mode = #tpu.pipeline_mode<synchronous>, transform_indices = @transform_8, window_bounds = array<i64: 1, 128>}, {pipeline_mode = #tpu.pipeline_mode<synchronous>, transform_indices = @transform_9, window_bounds = array<i64: 128, 128>}, {pipeline_mode = #tpu.pipeline_mode<synchronous>, transform_indices = @transform_10, window_bounds = array<i64: 1, 128>}, {pipeline_mode = #tpu.pipeline_mode<synchronous>, transform_indices = @transform_11, window_bounds = array<i64: 128, 4>}, {pipeline_mode = #tpu.pipeline_mode<synchronous>, transform_indices = @transform_12, window_bounds = array<i64: 1, 4>}, {transform_indices = @transform_13, window_bounds = array<i64: 1, 1, 4>}]} {
    %c0 = arith.constant 0 : index
    %c0_0 = arith.constant 0 : index
    %c0_1 = arith.constant 0 : index
    %0 = vector.load %arg1[%c0, %c0_0, %c0_1] : memref<1x128x36xf32, #tpu.memory_space<vmem>>, vector<1x128x36xf32>
    %1 = vector.shape_cast %0 : vector<1x128x36xf32> to vector<128x36xf32>
    %c0_2 = arith.constant 0 : index
    %c0_3 = arith.constant 0 : index
    %2 = vector.load %arg2[%c0_2, %c0_3] : memref<36x64xf32, #tpu.memory_space<vmem>>, vector<36x64xf32>
    %cst = arith.constant dense<0.000000e+00> : vector<128x64xf32>
    %3 = tpu.matmul %1, %2, %cst {dimension_numbers = #tpu.dot_dimension_numbers<[1], [0], [0], [1], [0, 0, 1, 1], [], []>} : vector<128x36xf32>, vector<36x64xf32>, vector<128x64xf32> -> vector<128x64xf32>
    %c0_4 = arith.constant 0 : index
    %c0_5 = arith.constant 0 : index
    %4 = vector.load %arg3[%c0_4, %c0_5] : memref<1x64xf32, #tpu.memory_space<vmem>>, vector<1x64xf32>
    %5 = vector.broadcast %4 : vector<1x64xf32> to vector<128x64xf32>
    %6 = arith.addf %3, %5 : vector<128x64xf32>
    %cst_6 = arith.constant 0.000000e+00 : f32
    %7 = vector.broadcast %cst_6 : f32 to vector<128x64xf32>
    %8 = arith.maximumf %6, %7 : vector<128x64xf32>
    %9 = vector.extract_strided_slice %8 {offsets = [0, 0], sizes = [32, 64], strides = [1, 1]} : vector<128x64xf32> to vector<32x64xf32>
    %10 = vector.extract_strided_slice %8 {offsets = [32, 0], sizes = [32, 64], strides = [1, 1]} : vector<128x64xf32> to vector<32x64xf32>
    %11 = arith.maximumf %9, %10 : vector<32x64xf32>
    %12 = vector.extract_strided_slice %8 {offsets = [64, 0], sizes = [32, 64], strides = [1, 1]} : vector<128x64xf32> to vector<32x64xf32>
    %13 = vector.extract_strided_slice %8 {offsets = [96, 0], sizes = [32, 64], strides = [1, 1]} : vector<128x64xf32> to vector<32x64xf32>
    %14 = arith.maximumf %12, %13 : vector<32x64xf32>
    %15 = arith.maximumf %11, %14 : vector<32x64xf32>
    %c0_7 = arith.constant 0 : index
    %c0_8 = arith.constant 0 : index
    %16 = vector.load %arg4[%c0_7, %c0_8] : memref<64x128xf32, #tpu.memory_space<vmem>>, vector<64x128xf32>
    %cst_9 = arith.constant dense<0.000000e+00> : vector<32x128xf32>
    %17 = tpu.matmul %15, %16, %cst_9 {dimension_numbers = #tpu.dot_dimension_numbers<[1], [0], [0], [1], [0, 0, 1, 1], [], []>} : vector<32x64xf32>, vector<64x128xf32>, vector<32x128xf32> -> vector<32x128xf32>
    %c0_10 = arith.constant 0 : index
    %c0_11 = arith.constant 0 : index
    %18 = vector.load %arg5[%c0_10, %c0_11] : memref<1x128xf32, #tpu.memory_space<vmem>>, vector<1x128xf32>
    %19 = vector.broadcast %18 : vector<1x128xf32> to vector<32x128xf32>
    %20 = arith.addf %17, %19 : vector<32x128xf32>
    %cst_12 = arith.constant 0.000000e+00 : f32
    %21 = vector.broadcast %cst_12 : f32 to vector<32x128xf32>
    %22 = arith.maximumf %20, %21 : vector<32x128xf32>
    %23 = vector.extract_strided_slice %22 {offsets = [0, 0], sizes = [10, 128], strides = [1, 1]} : vector<32x128xf32> to vector<10x128xf32>
    %24 = vector.extract_strided_slice %22 {offsets = [16, 0], sizes = [10, 128], strides = [1, 1]} : vector<32x128xf32> to vector<10x128xf32>
    %c0_13 = arith.constant 0 : index
    %c0_14 = arith.constant 0 : index
    %25 = vector.load %arg6[%c0_13, %c0_14] : memref<128x256xf32, #tpu.memory_space<vmem>>, vector<128x256xf32>
    %cst_15 = arith.constant dense<0.000000e+00> : vector<10x256xf32>
    %26 = tpu.matmul %24, %25, %cst_15 {dimension_numbers = #tpu.dot_dimension_numbers<[1], [0], [0], [1], [0, 0, 1, 1], [], []>} : vector<10x128xf32>, vector<128x256xf32>, vector<10x256xf32> -> vector<10x256xf32>
    %c0_16 = arith.constant 0 : index
    %c0_17 = arith.constant 0 : index
    %27 = vector.load %arg7[%c0_16, %c0_17] : memref<1x256xf32, #tpu.memory_space<vmem>>, vector<1x256xf32>
    %28 = vector.broadcast %27 : vector<1x256xf32> to vector<10x256xf32>
    %29 = arith.addf %26, %28 : vector<10x256xf32>
    %30 = vector.extract_strided_slice %29 {offsets = [0, 0], sizes = [10, 128], strides = [1, 1]} : vector<10x256xf32> to vector<10x128xf32>
    %31 = vector.extract_strided_slice %29 {offsets = [0, 128], sizes = [10, 128], strides = [1, 1]} : vector<10x256xf32> to vector<10x128xf32>
    %c0_18 = arith.constant 0 : index
    %c0_19 = arith.constant 0 : index
    %32 = vector.load %arg8[%c0_18, %c0_19] : memref<128x1024xf32, #tpu.memory_space<vmem>>, vector<128x1024xf32>
    %cst_20 = arith.constant dense<0.000000e+00> : vector<10x1024xf32>
    %33 = tpu.matmul %24, %32, %cst_20 {dimension_numbers = #tpu.dot_dimension_numbers<[1], [0], [0], [1], [0, 0, 1, 1], [], []>} : vector<10x128xf32>, vector<128x1024xf32>, vector<10x1024xf32> -> vector<10x1024xf32>
    %cst_21 = arith.constant 0.000000e+00 : f32
    %34 = vector.broadcast %cst_21 : f32 to vector<10x128xf32>
    %35 = vector.extract_strided_slice %30 {offsets = [0, 0], sizes = [10, 16], strides = [1, 1]} : vector<10x128xf32> to vector<10x16xf32>
    %36 = vector.extract_strided_slice %31 {offsets = [0, 0], sizes = [10, 16], strides = [1, 1]} : vector<10x128xf32> to vector<10x16xf32>
    %cst_22 = arith.constant dense<0.000000e+00> : vector<10x10xf32>
    %37 = tpu.matmul %35, %36, %cst_22 {dimension_numbers = #tpu.dot_dimension_numbers<[1], [1], [0], [0], [0, 0, 1, 0], [], []>} : vector<10x16xf32>, vector<10x16xf32>, vector<10x10xf32> -> vector<10x10xf32>
    %cst_23 = arith.constant dense<0xFF800000> : vector<10xf32>
    %38 = vector.multi_reduction <maximumf>, %37, %cst_23 [1] : vector<10x10xf32> to vector<10xf32>
    %39 = vector.shape_cast %38 : vector<10xf32> to vector<10x1xf32>
    %40 = vector.broadcast %39 : vector<10x1xf32> to vector<10x10xf32>
    %41 = arith.subf %37, %40 : vector<10x10xf32>
    %42 = math.exp %41 : vector<10x10xf32>
    %cst_24 = arith.constant dense<0.000000e+00> : vector<10xf32>
    %43 = vector.multi_reduction <add>, %42, %cst_24 [1] : vector<10x10xf32> to vector<10xf32>
    %44 = vector.shape_cast %43 : vector<10xf32> to vector<10x1xf32>
    %45 = tpu.reciprocal %44 {approx = true} : vector<10x1xf32> -> vector<10x1xf32>
    %46 = vector.broadcast %45 : vector<10x1xf32> to vector<10x10xf32>
    %47 = arith.mulf %42, %46 : vector<10x10xf32>
    %48 = vector.extract_strided_slice %33 {offsets = [0, 0], sizes = [10, 128], strides = [1, 1]} : vector<10x1024xf32> to vector<10x128xf32>
    %cst_25 = arith.constant dense<0.000000e+00> : vector<10x128xf32>
    %49 = tpu.matmul %47, %48, %cst_25 {dimension_numbers = #tpu.dot_dimension_numbers<[1], [0], [0], [1], [0, 0, 1, 1], [], []>} : vector<10x10xf32>, vector<10x128xf32>, vector<10x128xf32> -> vector<10x128xf32>
    %50 = arith.addf %34, %49 : vector<10x128xf32>
    %51 = vector.extract_strided_slice %30 {offsets = [0, 16], sizes = [10, 16], strides = [1, 1]} : vector<10x128xf32> to vector<10x16xf32>
    %52 = vector.extract_strided_slice %31 {offsets = [0, 16], sizes = [10, 16], strides = [1, 1]} : vector<10x128xf32> to vector<10x16xf32>
    %cst_26 = arith.constant dense<0.000000e+00> : vector<10x10xf32>
    %53 = tpu.matmul %51, %52, %cst_26 {dimension_numbers = #tpu.dot_dimension_numbers<[1], [1], [0], [0], [0, 0, 1, 0], [], []>} : vector<10x16xf32>, vector<10x16xf32>, vector<10x10xf32> -> vector<10x10xf32>
    %cst_27 = arith.constant dense<0xFF800000> : vector<10xf32>
    %54 = vector.multi_reduction <maximumf>, %53, %cst_27 [1] : vector<10x10xf32> to vector<10xf32>
    %55 = vector.shape_cast %54 : vector<10xf32> to vector<10x1xf32>
    %56 = vector.broadcast %55 : vector<10x1xf32> to vector<10x10xf32>
    %57 = arith.subf %53, %56 : vector<10x10xf32>
    %58 = math.exp %57 : vector<10x10xf32>
    %cst_28 = arith.constant dense<0.000000e+00> : vector<10xf32>
    %59 = vector.multi_reduction <add>, %58, %cst_28 [1] : vector<10x10xf32> to vector<10xf32>
    %60 = vector.shape_cast %59 : vector<10xf32> to vector<10x1xf32>
    %61 = tpu.reciprocal %60 {approx = true} : vector<10x1xf32> -> vector<10x1xf32>
    %62 = vector.broadcast %61 : vector<10x1xf32> to vector<10x10xf32>
    %63 = arith.mulf %58, %62 : vector<10x10xf32>
    %64 = vector.extract_strided_slice %33 {offsets = [0, 128], sizes = [10, 128], strides = [1, 1]} : vector<10x1024xf32> to vector<10x128xf32>
    %cst_29 = arith.constant dense<0.000000e+00> : vector<10x128xf32>
    %65 = tpu.matmul %63, %64, %cst_29 {dimension_numbers = #tpu.dot_dimension_numbers<[1], [0], [0], [1], [0, 0, 1, 1], [], []>} : vector<10x10xf32>, vector<10x128xf32>, vector<10x128xf32> -> vector<10x128xf32>
    %66 = arith.addf %50, %65 : vector<10x128xf32>
    %67 = vector.extract_strided_slice %30 {offsets = [0, 32], sizes = [10, 16], strides = [1, 1]} : vector<10x128xf32> to vector<10x16xf32>
    %68 = vector.extract_strided_slice %31 {offsets = [0, 32], sizes = [10, 16], strides = [1, 1]} : vector<10x128xf32> to vector<10x16xf32>
    %cst_30 = arith.constant dense<0.000000e+00> : vector<10x10xf32>
    %69 = tpu.matmul %67, %68, %cst_30 {dimension_numbers = #tpu.dot_dimension_numbers<[1], [1], [0], [0], [0, 0, 1, 0], [], []>} : vector<10x16xf32>, vector<10x16xf32>, vector<10x10xf32> -> vector<10x10xf32>
    %cst_31 = arith.constant dense<0xFF800000> : vector<10xf32>
    %70 = vector.multi_reduction <maximumf>, %69, %cst_31 [1] : vector<10x10xf32> to vector<10xf32>
    %71 = vector.shape_cast %70 : vector<10xf32> to vector<10x1xf32>
    %72 = vector.broadcast %71 : vector<10x1xf32> to vector<10x10xf32>
    %73 = arith.subf %69, %72 : vector<10x10xf32>
    %74 = math.exp %73 : vector<10x10xf32>
    %cst_32 = arith.constant dense<0.000000e+00> : vector<10xf32>
    %75 = vector.multi_reduction <add>, %74, %cst_32 [1] : vector<10x10xf32> to vector<10xf32>
    %76 = vector.shape_cast %75 : vector<10xf32> to vector<10x1xf32>
    %77 = tpu.reciprocal %76 {approx = true} : vector<10x1xf32> -> vector<10x1xf32>
    %78 = vector.broadcast %77 : vector<10x1xf32> to vector<10x10xf32>
    %79 = arith.mulf %74, %78 : vector<10x10xf32>
    %80 = vector.extract_strided_slice %33 {offsets = [0, 256], sizes = [10, 128], strides = [1, 1]} : vector<10x1024xf32> to vector<10x128xf32>
    %cst_33 = arith.constant dense<0.000000e+00> : vector<10x128xf32>
    %81 = tpu.matmul %79, %80, %cst_33 {dimension_numbers = #tpu.dot_dimension_numbers<[1], [0], [0], [1], [0, 0, 1, 1], [], []>} : vector<10x10xf32>, vector<10x128xf32>, vector<10x128xf32> -> vector<10x128xf32>
    %82 = arith.addf %66, %81 : vector<10x128xf32>
    %83 = vector.extract_strided_slice %30 {offsets = [0, 48], sizes = [10, 16], strides = [1, 1]} : vector<10x128xf32> to vector<10x16xf32>
    %84 = vector.extract_strided_slice %31 {offsets = [0, 48], sizes = [10, 16], strides = [1, 1]} : vector<10x128xf32> to vector<10x16xf32>
    %cst_34 = arith.constant dense<0.000000e+00> : vector<10x10xf32>
    %85 = tpu.matmul %83, %84, %cst_34 {dimension_numbers = #tpu.dot_dimension_numbers<[1], [1], [0], [0], [0, 0, 1, 0], [], []>} : vector<10x16xf32>, vector<10x16xf32>, vector<10x10xf32> -> vector<10x10xf32>
    %cst_35 = arith.constant dense<0xFF800000> : vector<10xf32>
    %86 = vector.multi_reduction <maximumf>, %85, %cst_35 [1] : vector<10x10xf32> to vector<10xf32>
    %87 = vector.shape_cast %86 : vector<10xf32> to vector<10x1xf32>
    %88 = vector.broadcast %87 : vector<10x1xf32> to vector<10x10xf32>
    %89 = arith.subf %85, %88 : vector<10x10xf32>
    %90 = math.exp %89 : vector<10x10xf32>
    %cst_36 = arith.constant dense<0.000000e+00> : vector<10xf32>
    %91 = vector.multi_reduction <add>, %90, %cst_36 [1] : vector<10x10xf32> to vector<10xf32>
    %92 = vector.shape_cast %91 : vector<10xf32> to vector<10x1xf32>
    %93 = tpu.reciprocal %92 {approx = true} : vector<10x1xf32> -> vector<10x1xf32>
    %94 = vector.broadcast %93 : vector<10x1xf32> to vector<10x10xf32>
    %95 = arith.mulf %90, %94 : vector<10x10xf32>
    %96 = vector.extract_strided_slice %33 {offsets = [0, 384], sizes = [10, 128], strides = [1, 1]} : vector<10x1024xf32> to vector<10x128xf32>
    %cst_37 = arith.constant dense<0.000000e+00> : vector<10x128xf32>
    %97 = tpu.matmul %95, %96, %cst_37 {dimension_numbers = #tpu.dot_dimension_numbers<[1], [0], [0], [1], [0, 0, 1, 1], [], []>} : vector<10x10xf32>, vector<10x128xf32>, vector<10x128xf32> -> vector<10x128xf32>
    %98 = arith.addf %82, %97 : vector<10x128xf32>
    %99 = vector.extract_strided_slice %30 {offsets = [0, 64], sizes = [10, 16], strides = [1, 1]} : vector<10x128xf32> to vector<10x16xf32>
    %100 = vector.extract_strided_slice %31 {offsets = [0, 64], sizes = [10, 16], strides = [1, 1]} : vector<10x128xf32> to vector<10x16xf32>
    %cst_38 = arith.constant dense<0.000000e+00> : vector<10x10xf32>
    %101 = tpu.matmul %99, %100, %cst_38 {dimension_numbers = #tpu.dot_dimension_numbers<[1], [1], [0], [0], [0, 0, 1, 0], [], []>} : vector<10x16xf32>, vector<10x16xf32>, vector<10x10xf32> -> vector<10x10xf32>
    %cst_39 = arith.constant dense<0xFF800000> : vector<10xf32>
    %102 = vector.multi_reduction <maximumf>, %101, %cst_39 [1] : vector<10x10xf32> to vector<10xf32>
    %103 = vector.shape_cast %102 : vector<10xf32> to vector<10x1xf32>
    %104 = vector.broadcast %103 : vector<10x1xf32> to vector<10x10xf32>
    %105 = arith.subf %101, %104 : vector<10x10xf32>
    %106 = math.exp %105 : vector<10x10xf32>
    %cst_40 = arith.constant dense<0.000000e+00> : vector<10xf32>
    %107 = vector.multi_reduction <add>, %106, %cst_40 [1] : vector<10x10xf32> to vector<10xf32>
    %108 = vector.shape_cast %107 : vector<10xf32> to vector<10x1xf32>
    %109 = tpu.reciprocal %108 {approx = true} : vector<10x1xf32> -> vector<10x1xf32>
    %110 = vector.broadcast %109 : vector<10x1xf32> to vector<10x10xf32>
    %111 = arith.mulf %106, %110 : vector<10x10xf32>
    %112 = vector.extract_strided_slice %33 {offsets = [0, 512], sizes = [10, 128], strides = [1, 1]} : vector<10x1024xf32> to vector<10x128xf32>
    %cst_41 = arith.constant dense<0.000000e+00> : vector<10x128xf32>
    %113 = tpu.matmul %111, %112, %cst_41 {dimension_numbers = #tpu.dot_dimension_numbers<[1], [0], [0], [1], [0, 0, 1, 1], [], []>} : vector<10x10xf32>, vector<10x128xf32>, vector<10x128xf32> -> vector<10x128xf32>
    %114 = arith.addf %98, %113 : vector<10x128xf32>
    %115 = vector.extract_strided_slice %30 {offsets = [0, 80], sizes = [10, 16], strides = [1, 1]} : vector<10x128xf32> to vector<10x16xf32>
    %116 = vector.extract_strided_slice %31 {offsets = [0, 80], sizes = [10, 16], strides = [1, 1]} : vector<10x128xf32> to vector<10x16xf32>
    %cst_42 = arith.constant dense<0.000000e+00> : vector<10x10xf32>
    %117 = tpu.matmul %115, %116, %cst_42 {dimension_numbers = #tpu.dot_dimension_numbers<[1], [1], [0], [0], [0, 0, 1, 0], [], []>} : vector<10x16xf32>, vector<10x16xf32>, vector<10x10xf32> -> vector<10x10xf32>
    %cst_43 = arith.constant dense<0xFF800000> : vector<10xf32>
    %118 = vector.multi_reduction <maximumf>, %117, %cst_43 [1] : vector<10x10xf32> to vector<10xf32>
    %119 = vector.shape_cast %118 : vector<10xf32> to vector<10x1xf32>
    %120 = vector.broadcast %119 : vector<10x1xf32> to vector<10x10xf32>
    %121 = arith.subf %117, %120 : vector<10x10xf32>
    %122 = math.exp %121 : vector<10x10xf32>
    %cst_44 = arith.constant dense<0.000000e+00> : vector<10xf32>
    %123 = vector.multi_reduction <add>, %122, %cst_44 [1] : vector<10x10xf32> to vector<10xf32>
    %124 = vector.shape_cast %123 : vector<10xf32> to vector<10x1xf32>
    %125 = tpu.reciprocal %124 {approx = true} : vector<10x1xf32> -> vector<10x1xf32>
    %126 = vector.broadcast %125 : vector<10x1xf32> to vector<10x10xf32>
    %127 = arith.mulf %122, %126 : vector<10x10xf32>
    %128 = vector.extract_strided_slice %33 {offsets = [0, 640], sizes = [10, 128], strides = [1, 1]} : vector<10x1024xf32> to vector<10x128xf32>
    %cst_45 = arith.constant dense<0.000000e+00> : vector<10x128xf32>
    %129 = tpu.matmul %127, %128, %cst_45 {dimension_numbers = #tpu.dot_dimension_numbers<[1], [0], [0], [1], [0, 0, 1, 1], [], []>} : vector<10x10xf32>, vector<10x128xf32>, vector<10x128xf32> -> vector<10x128xf32>
    %130 = arith.addf %114, %129 : vector<10x128xf32>
    %131 = vector.extract_strided_slice %30 {offsets = [0, 96], sizes = [10, 16], strides = [1, 1]} : vector<10x128xf32> to vector<10x16xf32>
    %132 = vector.extract_strided_slice %31 {offsets = [0, 96], sizes = [10, 16], strides = [1, 1]} : vector<10x128xf32> to vector<10x16xf32>
    %cst_46 = arith.constant dense<0.000000e+00> : vector<10x10xf32>
    %133 = tpu.matmul %131, %132, %cst_46 {dimension_numbers = #tpu.dot_dimension_numbers<[1], [1], [0], [0], [0, 0, 1, 0], [], []>} : vector<10x16xf32>, vector<10x16xf32>, vector<10x10xf32> -> vector<10x10xf32>
    %cst_47 = arith.constant dense<0xFF800000> : vector<10xf32>
    %134 = vector.multi_reduction <maximumf>, %133, %cst_47 [1] : vector<10x10xf32> to vector<10xf32>
    %135 = vector.shape_cast %134 : vector<10xf32> to vector<10x1xf32>
    %136 = vector.broadcast %135 : vector<10x1xf32> to vector<10x10xf32>
    %137 = arith.subf %133, %136 : vector<10x10xf32>
    %138 = math.exp %137 : vector<10x10xf32>
    %cst_48 = arith.constant dense<0.000000e+00> : vector<10xf32>
    %139 = vector.multi_reduction <add>, %138, %cst_48 [1] : vector<10x10xf32> to vector<10xf32>
    %140 = vector.shape_cast %139 : vector<10xf32> to vector<10x1xf32>
    %141 = tpu.reciprocal %140 {approx = true} : vector<10x1xf32> -> vector<10x1xf32>
    %142 = vector.broadcast %141 : vector<10x1xf32> to vector<10x10xf32>
    %143 = arith.mulf %138, %142 : vector<10x10xf32>
    %144 = vector.extract_strided_slice %33 {offsets = [0, 768], sizes = [10, 128], strides = [1, 1]} : vector<10x1024xf32> to vector<10x128xf32>
    %cst_49 = arith.constant dense<0.000000e+00> : vector<10x128xf32>
    %145 = tpu.matmul %143, %144, %cst_49 {dimension_numbers = #tpu.dot_dimension_numbers<[1], [0], [0], [1], [0, 0, 1, 1], [], []>} : vector<10x10xf32>, vector<10x128xf32>, vector<10x128xf32> -> vector<10x128xf32>
    %146 = arith.addf %130, %145 : vector<10x128xf32>
    %147 = vector.extract_strided_slice %30 {offsets = [0, 112], sizes = [10, 16], strides = [1, 1]} : vector<10x128xf32> to vector<10x16xf32>
    %148 = vector.extract_strided_slice %31 {offsets = [0, 112], sizes = [10, 16], strides = [1, 1]} : vector<10x128xf32> to vector<10x16xf32>
    %cst_50 = arith.constant dense<0.000000e+00> : vector<10x10xf32>
    %149 = tpu.matmul %147, %148, %cst_50 {dimension_numbers = #tpu.dot_dimension_numbers<[1], [1], [0], [0], [0, 0, 1, 0], [], []>} : vector<10x16xf32>, vector<10x16xf32>, vector<10x10xf32> -> vector<10x10xf32>
    %cst_51 = arith.constant dense<0xFF800000> : vector<10xf32>
    %150 = vector.multi_reduction <maximumf>, %149, %cst_51 [1] : vector<10x10xf32> to vector<10xf32>
    %151 = vector.shape_cast %150 : vector<10xf32> to vector<10x1xf32>
    %152 = vector.broadcast %151 : vector<10x1xf32> to vector<10x10xf32>
    %153 = arith.subf %149, %152 : vector<10x10xf32>
    %154 = math.exp %153 : vector<10x10xf32>
    %cst_52 = arith.constant dense<0.000000e+00> : vector<10xf32>
    %155 = vector.multi_reduction <add>, %154, %cst_52 [1] : vector<10x10xf32> to vector<10xf32>
    %156 = vector.shape_cast %155 : vector<10xf32> to vector<10x1xf32>
    %157 = tpu.reciprocal %156 {approx = true} : vector<10x1xf32> -> vector<10x1xf32>
    %158 = vector.broadcast %157 : vector<10x1xf32> to vector<10x10xf32>
    %159 = arith.mulf %154, %158 : vector<10x10xf32>
    %160 = vector.extract_strided_slice %33 {offsets = [0, 896], sizes = [10, 128], strides = [1, 1]} : vector<10x1024xf32> to vector<10x128xf32>
    %cst_53 = arith.constant dense<0.000000e+00> : vector<10x128xf32>
    %161 = tpu.matmul %159, %160, %cst_53 {dimension_numbers = #tpu.dot_dimension_numbers<[1], [0], [0], [1], [0, 0, 1, 1], [], []>} : vector<10x10xf32>, vector<10x128xf32>, vector<10x128xf32> -> vector<10x128xf32>
    %162 = arith.addf %146, %161 : vector<10x128xf32>
    %c0_54 = arith.constant 0 : index
    %c0_55 = arith.constant 0 : index
    %163 = vector.load %arg9[%c0_54, %c0_55] : memref<1x128xf32, #tpu.memory_space<vmem>>, vector<1x128xf32>
    %164 = vector.broadcast %163 : vector<1x128xf32> to vector<10x128xf32>
    %165 = arith.addf %162, %164 : vector<10x128xf32>
    %166 = arith.addf %23, %165 : vector<10x128xf32>
    %c0_56 = arith.constant 0 : index
    %c0_57 = arith.constant 0 : index
    %167 = vector.load %arg10[%c0_56, %c0_57] : memref<128x128xf32, #tpu.memory_space<vmem>>, vector<128x128xf32>
    %cst_58 = arith.constant dense<0.000000e+00> : vector<10x128xf32>
    %168 = tpu.matmul %166, %167, %cst_58 {dimension_numbers = #tpu.dot_dimension_numbers<[1], [0], [0], [1], [0, 0, 1, 1], [], []>} : vector<10x128xf32>, vector<128x128xf32>, vector<10x128xf32> -> vector<10x128xf32>
    %c0_59 = arith.constant 0 : index
    %c0_60 = arith.constant 0 : index
    %169 = vector.load %arg11[%c0_59, %c0_60] : memref<1x128xf32, #tpu.memory_space<vmem>>, vector<1x128xf32>
    %170 = vector.broadcast %169 : vector<1x128xf32> to vector<10x128xf32>
    %171 = arith.addf %168, %170 : vector<10x128xf32>
    %cst_61 = arith.constant 0.000000e+00 : f32
    %172 = vector.broadcast %cst_61 : f32 to vector<10x128xf32>
    %173 = arith.maximumf %171, %172 : vector<10x128xf32>
    %cst_62 = arith.constant dense<0.000000e+00> : vector<128xf32>
    %174 = vector.multi_reduction <add>, %173, %cst_62 [0] : vector<10x128xf32> to vector<128xf32>
    %175 = vector.shape_cast %174 : vector<128xf32> to vector<1x128xf32>
    %cst_63 = arith.constant 1.000000e-01 : f32
    %176 = vector.broadcast %cst_63 : f32 to vector<1x128xf32>
    %177 = arith.mulf %175, %176 : vector<1x128xf32>
    %c0_64 = arith.constant 0 : index
    %c0_65 = arith.constant 0 : index
    %178 = vector.load %arg12[%c0_64, %c0_65] : memref<128x4xf32, #tpu.memory_space<vmem>>, vector<128x4xf32>
    %cst_66 = arith.constant dense<0.000000e+00> : vector<1x4xf32>
    %179 = tpu.matmul %177, %178, %cst_66 {dimension_numbers = #tpu.dot_dimension_numbers<[1], [0], [0], [1], [0, 0, 1, 1], [], []>} : vector<1x128xf32>, vector<128x4xf32>, vector<1x4xf32> -> vector<1x4xf32>
    %c0_67 = arith.constant 0 : index
    %c0_68 = arith.constant 0 : index
    %180 = vector.load %arg13[%c0_67, %c0_68] : memref<1x4xf32, #tpu.memory_space<vmem>>, vector<1x4xf32>
    %181 = arith.addf %179, %180 : vector<1x4xf32>
    %c0_69 = arith.constant 0 : index
    %c0_70 = arith.constant 0 : index
    %c0_71 = arith.constant 0 : index
    %182 = vector.load %arg14[%c0_69, %c0_70, %c0_71] : memref<1x1x4xf32, #tpu.memory_space<vmem>>, vector<1x1x4xf32>
    %183 = vector.shape_cast %182 : vector<1x1x4xf32> to vector<1x4xf32>
    %184 = vector.shape_cast %181 : vector<1x4xf32> to vector<1x1x4xf32>
    tpu.vector_store %arg14[%c0_69, %c0_70, %c0_71], %184 {strides = array<i32>} : memref<1x1x4xf32, #tpu.memory_space<vmem>>, vector<1x1x4xf32>,
    return
  }
  func.func @transform_0(%arg0: i32) -> (i32, i32, i32) {
    %c0_i32 = arith.constant 0 : i32
    %c0_i32_0 = arith.constant 0 : i32
    %c0_i32_1 = arith.constant 0 : i32
    return %arg0, %c0_i32, %c0_i32_0 : i32, i32, i32
  }
  func.func @transform_1(%arg0: i32) -> (i32, i32) {
    %c0_i32 = arith.constant 0 : i32
    %c0_i32_0 = arith.constant 0 : i32
    %c0_i32_1 = arith.constant 0 : i32
    return %c0_i32, %c0_i32_0 : i32, i32
  }
  func.func @transform_2(%arg0: i32) -> (i32, i32) {
    %c0_i32 = arith.constant 0 : i32
    %c0_i32_0 = arith.constant 0 : i32
    %c0_i32_1 = arith.constant 0 : i32
    return %c0_i32, %c0_i32_0 : i32, i32
  }
  func.func @transform_3(%arg0: i32) -> (i32, i32) {
    %c0_i32 = arith.constant 0 : i32
    %c0_i32_0 = arith.constant 0 : i32
    %c0_i32_1 = arith.constant 0 : i32
    return %c0_i32, %c0_i32_0 : i32, i32
  }
  func.func @transform_4(%arg0: i32) -> (i32, i32) {
    %c0_i32 = arith.constant 0 : i32
    %c0_i32_0 = arith.constant 0 : i32
    %c0_i32_1 = arith.constant 0 : i32
    return %c0_i32, %c0_i32_0 : i32, i32
  }
  func.func @transform_5(%arg0: i32) -> (i32, i32) {
    %c0_i32 = arith.constant 0 : i32
    %c0_i32_0 = arith.constant 0 : i32
    %c0_i32_1 = arith.constant 0 : i32
    return %c0_i32, %c0_i32_0 : i32, i32
  }
  func.func @transform_6(%arg0: i32) -> (i32, i32) {
    %c0_i32 = arith.constant 0 : i32
    %c0_i32_0 = arith.constant 0 : i32
    %c0_i32_1 = arith.constant 0 : i32
    return %c0_i32, %c0_i32_0 : i32, i32
  }
  func.func @transform_7(%arg0: i32) -> (i32, i32) {
    %c0_i32 = arith.constant 0 : i32
    %c0_i32_0 = arith.constant 0 : i32
    %c0_i32_1 = arith.constant 0 : i32
    return %c0_i32, %c0_i32_0 : i32, i32
  }
  func.func @transform_8(%arg0: i32) -> (i32, i32) {
    %c0_i32 = arith.constant 0 : i32
    %c0_i32_0 = arith.constant 0 : i32
    %c0_i32_1 = arith.constant 0 : i32
    return %c0_i32, %c0_i32_0 : i32, i32
  }
  func.func @transform_9(%arg0: i32) -> (i32, i32) {
    %c0_i32 = arith.constant 0 : i32
    %c0_i32_0 = arith.constant 0 : i32
    %c0_i32_1 = arith.constant 0 : i32
    return %c0_i32, %c0_i32_0 : i32, i32
  }
  func.func @transform_10(%arg0: i32) -> (i32, i32) {
    %c0_i32 = arith.constant 0 : i32
    %c0_i32_0 = arith.constant 0 : i32
    %c0_i32_1 = arith.constant 0 : i32
    return %c0_i32, %c0_i32_0 : i32, i32
  }
  func.func @transform_11(%arg0: i32) -> (i32, i32) {
    %c0_i32 = arith.constant 0 : i32
    %c0_i32_0 = arith.constant 0 : i32
    %c0_i32_1 = arith.constant 0 : i32
    return %c0_i32, %c0_i32_0 : i32, i32
  }
  func.func @transform_12(%arg0: i32) -> (i32, i32) {
    %c0_i32 = arith.constant 0 : i32
    %c0_i32_0 = arith.constant 0 : i32
    %c0_i32_1 = arith.constant 0 : i32
    return %c0_i32, %c0_i32_0 : i32, i32
  }
  func.func @transform_13(%arg0: i32) -> (i32, i32, i32) {
    %c0_i32 = arith.constant 0 : i32
    %c0_i32_0 = arith.constant 0 : i32
    %c0_i32_1 = arith.constant 0 : i32
    return %arg0, %c0_i32, %c0_i32_0 : i32, i32, i32
  }
}

</mosaic_0001>

<bundles_post_ra>
// kernel: rule_inference_forward.1
= control target key start
LH: loop header
LB: loop body
LE: loop exit
PB: predicated region body
PF: predicated region fallthrough
CT: control target
= control target key end

     0   :  { %s5355_s0 = inlined_call_operand.vmem [shape: f32[2,128,36], index: 0, kind: input, shape index: {}]   ;;  %s5356_s1 = inlined_call_operand.vmem [shape: f32[36,64], index: 1, kind: input, shape index: {}]   ;;  %s5357_s2 = inlined_call_operand.vmem [shape: f32[1,64], index: 2, kind: input, shape index: {}]   ;;  %s5358_s3 = inlined_call_operand.vmem [shape: f32[64,128], index: 3, kind: input, shape index: {}]   ;;  %s5359_s4 = inlined_call_operand.vmem [shape: f32[1,128], index: 4, kind: input, shape index: {}]   ;;  %s5360_s5 = inlined_call_operand.vmem [shape: f32[128,256], index: 5, kind: input, shape index: {}]   ;;  %s5361_s6 = inlined_call_operand.vmem [shape: f32[1,256], index: 6, kind: input, shape index: {}]   ;;  %s5362_s7 = inlined_call_operand.vmem [shape: f32[128,1024], index: 7, kind: input, shape index: {}]   ;;  %s5363_s8 = inlined_call_operand.vmem [shape: f32[1,128], index: 8, kind: input, shape index: {}]   ;;  %s5364_s9 = inlined_call_operand.vmem [shape: f32[128,128], index: 9, kind: input, shape index: {}]   ;;  %s5365_s10 = inlined_call_operand.vmem [shape: f32[1,128], index: 10, kind: input, shape index: {}]   ;;  %s5366_s11 = inlined_call_operand.vmem [shape: f32[128,4], index: 11, kind: input, shape index: {}]   ;;  %s5367_s12 = inlined_call_operand.vmem [shape: f32[1,4], index: 12, kind: input, shape index: {}]   ;;  %s5368_s13 = inlined_call_operand.hbm [shape: f32[2,1,4], index: 13, kind: output, shape index: {}]  }
   0x1   :  { %5369 = sst [smem:[#allocation6_spill]] %s5355_s0 }
   0x2   :  { %5370 = sst [smem:[#allocation7_spill]] %s5356_s1 }
   0x3   :  { %5371 = sst [smem:[#allocation8_spill]] %s5357_s2 }
   0x4   :  { %18 = vsyncpa [#allocation3], 0 }
   0x5   :  { %20 = vsyncpa [#allocation3 + $0x1], 0  ;;  %s4337_s25 = smov 0   ;;  %s4339_s26 = smov 0  }
   0x6   :  { %s4341_s27 = smov 0   ;;  %s4343_s28 = smov 0  }
   0x7 LB: > { %s4358_s29 = sadd.s32 4294967295, %s4253_s28   ;;  %s3231_s30 = sadd.s32 4294967294, %s4253_s28   ;;  %s4253_s28 = sphi %s4343_s28, %s5386_s28   ;;  %s4249_s27 = sphi %s4341_s27, %s5385_s27   ;;  %s4245_s26 = sphi %s4339_s26, %s5384_s26   ;;  %s4241_s25 = sphi %s4337_s25, %s5383_s25  }
   0x8   : > { %s4362_s14 = sadd.s32 1, %s4253_s28   ;;  %s311_s15 = sadd.s32 1, %s4249_s27 }
   0x9   : > { %s308_s16 = ssub.s32 %s4253_s28, %s4362_s14  ;;  %p321_p0 = scmp.ne.s32.totalorder %s4249_s27, %s4245_s26 }
   0xa   : > { %p309_p1 = scmp.eq.s32.totalorder %s308_s16, 0  ;;  %p322_p2 = scmp.eq.s32.totalorder %s4358_s29, 1 }
   0xb   : > { %p327_p3 = scmp.ne.s32.totalorder %s4245_s26, %s4241_s25  ;;  %p328_p4 = scmp.eq.s32.totalorder %s3231_s30, 1 }
   0xc   : > { %s4373_s17 = scalar_select %p309_p1, %s4249_s27, %s311_s15  }
   0xd   : > { %p4375_p5 = por %p322_p2, %p321_p0  ;;  %p4379_p6 = por %p328_p4, %p327_p3 }
   0xe   : > { %5372 = sst [smem:[#allocation5_spill]] %s4373_s17  ;;  %p3234_p7 = scmp.ge.s32.totalorder %s4253_s28, 1 }
   0xf   : > { %p390_p8 = scmp.lt.s32.totalorder %s4253_s28, 3 }
  0x11   : > { %p391_p9 = pnand %p3234_p7, %p390_p8 }
  0x12   : > { %s5375_s1 = sld [smem:[#allocation7_spill]] (!%p391_p9)  ;;  %p433_p10 = scmp.lt.s32.totalorder (!%p391_p9), %s4358_s29, 1  ;;  %vm466_vm0 = vcmask (!%p391_p9), 293888   ;;  %vm515_vm1 = vcmask (!%p391_p9), 1043456   ;;  %v692_v23 = vld [vmem:[%s5358_s3] sm:$0xff] (!%p391_p9)  ;;  %v693_v24 = vld [vmem:[%s5358_s3 + $0x8] sm:$0xff] (!%p391_p9) }
  0x13   : > { %394 = sbr.rel (%p391_p9) target bundleno = 3260 (0xcbc), region = 72  ;;  %s5376_s0 = sld [smem:[#allocation6_spill]] (!%p391_p9)  ;;  %v3700_v25 = vpack.c.bf16 (!%p391_p9), %v693_v24, %v692_v23  ;;  %v694_v26 = vld [vmem:[%s5358_s3 + $0x10] sm:$0xff] (!%p391_p9)  ;;  %v695_v27 = vld [vmem:[%s5358_s3 + $0x18] sm:$0xff] (!%p391_p9)  ;;  %v696_v29 = vld [vmem:[%s5358_s3 + $0x20] sm:$0xff] (!%p391_p9)  ;;  %vm707_vm2 = vcmask (!%p391_p9), 523264  }
  0x14   : > { %v3704_v28 = vpack.c.bf16 (!%p391_p9), %v695_v27, %v694_v26  ;;  %v697_v30 = vld [vmem:[%s5358_s3 + $0x28] sm:$0xff] (!%p391_p9)  ;;  %v698_v32 = vld [vmem:[%s5358_s3 + $0x30] sm:$0xff] (!%p391_p9)  ;;  %v699_v33 = vld [vmem:[%s5358_s3 + $0x38] sm:$0xff] (!%p391_p9)  ;;  %s5377_s2 = sld [smem:[#allocation8_spill]] (!%p391_p9)  ;;  %vm1366_vm3 = vcmask (!%p391_p9), 130048   ;;  %s4257_s21 = smov (!%p391_p9), 80  }
  0x15   : > { %3701 = vmatprep.subr.bf16.mxu1 (!%p391_p9), %v3700_v25  ;;  %v3708_v31 = vpack.c.bf16 (!%p391_p9), %v697_v30, %v696_v29  ;;  %v3712_v34 = vpack.c.bf16 (!%p391_p9), %v699_v33, %v698_v32  ;;  %v810_v35 = vld [vmem:[%s5360_s5 + $0x8] sm:$0xff] (!%p391_p9)  ;;  %v812_v36 = vld [vmem:[%s5360_s5 + $0x18] sm:$0xff] (!%p391_p9)  ;;  %v809_v40 = vld [vmem:[%s5360_s5] sm:$0xff] (!%p391_p9)  ;;  %vm1597_vm5 = vcmask (!%p391_p9), 1041408   ;;  %vm4258_vm6 = vmmov (!%p391_p9), 1   ;;  %s4260_s22 = smov (!%p391_p9), 64  }
  0x16   : > { %3703 = vmatpush3.bf16.msra.mxu1 (!%p391_p9), %v3700_v25  ;;  %v931_v37 = vld [vmem:[%s5362_s7 + $0x8] sm:$0xff] (!%p391_p9)  ;;  %v3716_v38 = vpack.c.bf16 (!%p391_p9), %v812_v36, %v810_v35  ;;  %v811_v41 = vld [vmem:[%s5360_s5 + $0x10] sm:$0xff] (!%p391_p9)  ;;  %v816_v45 = vld [vmem:[%s5360_s5 + $0x38] sm:$0xff] (!%p391_p9)  ;;  %vm1458_vm8 = vcmask (!%p391_p9), 74752   ;;  %vm1454_vm9 = vcmask (!%p391_p9), 80896   ;;  %s4261_s24 = smov (!%p391_p9), 48  }
  0x17   : > { %3705 = vmatprep.subr.bf16.mxu1 (!%p391_p9), %v3704_v28  ;;  %v939_v39 = vld [vmem:[%s5362_s7 + $0x48] sm:$0xff] (!%p391_p9)  ;;  %v3718_v43 = vpack.c.bf16 (!%p391_p9), %v811_v41, %v809_v40  ;;  %v813_v47 = vld [vmem:[%s5360_s5 + $0x20] sm:$0xff] (!%p391_p9)  ;;  %v815_v48 = vld [vmem:[%s5360_s5 + $0x30] sm:$0xff] (!%p391_p9)  ;;  %s4262_s30 = smov (!%p391_p9), 16   ;;  %vm4265_vm10 = vmmov (!%p391_p9), 0   ;;  %vm3161_vm11 = vcmask (!%p391_p9), 24576  }
  0x18   : > { %v454_v0 = vld [vmem:[%s5375_s1] sm:$0xff] (!%p391_p9)  ;;  %v455_v1 = vld [vmem:[%s5375_s1 + $0x8] sm:$0xff] (!%p391_p9)  ;;  %v456_v2 = vld [vmem:[%s5375_s1 + $0x10] sm:$0xff] (!%p391_p9)  ;;  %v3748_v42 = vpack.c.bf16 (!%p391_p9), %v939_v39, %v931_v37  ;;  %v3722_v49 = vpack.c.bf16 (!%p391_p9), %v815_v48, %v813_v47 }
  0x19   : > { %v3692_v3 = vpack.c.bf16 (!%p391_p9), %v455_v1, %v454_v0  ;;  %v457_v4 = vld [vmem:[%s5375_s1 + $0x18] sm:$0xff] (!%p391_p9)  ;;  %v458_v6 = vld [vmem:[%s5375_s1 + $0x20] sm:$0xf] (!%p391_p9)  ;;  %v814_v44 = vld [vmem:[%s5360_s5 + $0x28] sm:$0xff] (!%p391_p9)  ;;  %s4256_s1 = smov (!%p391_p9), 112  }
  0x1a   : > { %v3696_v5 = vpack.c.bf16 %v457_v4, %v456_v2  ;;  %s434_s17 = scalar_select %p433_p10, %s4358_s29, 1  ;;  %3707 = vmatpush3.bf16.msra.mxu1 %v3704_v28  ;;  %v3720_v46 = vpack.c.bf16 %v816_v45, %v814_v44  ;;  %v818_v50 = vld [vmem:[%s5360_s5 + $0x48] sm:$0xff]  ;;  %v820_v51 = vld [vmem:[%s5360_s5 + $0x58] sm:$0xff]  ;;  %v817_v53 = vld [vmem:[%s5360_s5 + $0x40] sm:$0xff] }
  0x1b   : > { %3693 = vmatprep.subr.bf16.mxu0 %v3692_v3  ;;  %3709 = vmatprep.subr.bf16.mxu1 %v3708_v31  ;;  %v3724_v52 = vpack.c.bf16 %v820_v51, %v818_v50  ;;  %v819_v54 = vld [vmem:[%s5360_s5 + $0x50] sm:$0xff]  ;;  %v822_v56 = vld [vmem:[%s5360_s5 + $0x68] sm:$0xff]  ;;  %v824_v57 = vld [vmem:[%s5360_s5 + $0x78] sm:$0xff] }
  0x1c   : > { %3695 = vmatpush3.bf16.msra.mxu0 %v3692_v3  ;;  %s3321_s20 = sshll.u32 %s434_s17, 7  ;;  %v3726_v55 = vpack.c.bf16 %v819_v54, %v817_v53  ;;  %v3728_v58 = vpack.c.bf16 %v824_v57, %v822_v56  ;;  %v821_v59 = vld [vmem:[%s5360_s5 + $0x60] sm:$0xff]  ;;  %v823_v60 = vld [vmem:[%s5360_s5 + $0x70] sm:$0xff]  ;;  %v826_v61 = vld [vmem:[%s5360_s5 + $0x88] sm:$0xff] }
  0x1d   : > { %3697 = vmatprep.subr.bf16.mxu0 %v3696_v5  ;;  %s4402_s23 = scalar_lea.vmem %s5376_s0, %s3321_s20  ;;  %v828_v62 = vld [vmem:[%s5360_s5 + $0x98] sm:$0xff]  ;;  %v3730_v63 = vpack.c.bf16 %v823_v60, %v821_v59  ;;  %v825_v1 = vld [vmem:[%s5360_s5 + $0x80] sm:$0xff]  ;;  %v827_v2 = vld [vmem:[%s5360_s5 + $0x90] sm:$0xff] }
  0x1e   : > { %v438_v7 = vld [vmem:[%s4402_s23] sm:$0xff]  ;;  %v439_v8 = vld [vmem:[%s4402_s23 + $0x8] sm:$0xff]  ;;  %v440_v9 = vld [vmem:[%s4402_s23 + $0x10] sm:$0xff]  ;;  %3711 = vmatpush3.bf16.msra.mxu1 %v3708_v31  ;;  %v3732_v0 = vpack.c.bf16 %v828_v62, %v826_v61 }
  0x1f   : > { %3464 = vmatprep.mubr.msk.f32.mxu0 %vm466_vm0, %v438_v7  ;;  %v441_v10 = vld [vmem:[%s4402_s23 + $0x18] sm:$0xff]  ;;  %v442_v11 = vld [vmem:[%s4402_s23 + $0x20] sm:$0xff]  ;;  %v443_v12 = vld [vmem:[%s4402_s23 + $0x28] sm:$0xff]  ;;  %3713 = vmatprep.subr.bf16.mxu1 %v3712_v34 }
  0x20   : > { %3699 = vmatpush3.bf16.msra.mxu0 %v3696_v5  ;;  %v444_v13 = vld [vmem:[%s4402_s23 + $0x30] sm:$0xff]  ;;  %v445_v14 = vld [vmem:[%s4402_s23 + $0x38] sm:$0xff]  ;;  %v446_v15 = vld [vmem:[%s4402_s23 + $0x40] sm:$0xff]  ;;  %v3734_v5 = vpack.c.bf16 %v827_v2, %v825_v1 }
  0x21   : > { %3462 = vmatprep.subr.msk.mxu0 %vm515_vm1, %v458_v6  ;;  %v447_v16 = vld [vmem:[%s4402_s23 + $0x48] sm:$0xff]  ;;  %v448_v17 = vld [vmem:[%s4402_s23 + $0x50] sm:$0xff]  ;;  %v449_v18 = vld [vmem:[%s4402_s23 + $0x58] sm:$0xff] }
  0x22   : > { %v450_v19 = vld [vmem:[%s4402_s23 + $0x60] sm:$0xff]  ;;  %v451_v20 = vld [vmem:[%s4402_s23 + $0x68] sm:$0xff]  ;;  %v452_v21 = vld [vmem:[%s4402_s23 + $0x70] sm:$0xff]  ;;  %3715 = vmatpush3.bf16.msra.mxu1 %v3712_v34 }
  0x23   : > { %v453_v22 = vld [vmem:[%s4402_s23 + $0x78] sm:$0xff]  ;;  %3749 = vmatprep.subr.bf16.mxu1 %v3748_v42  ;;  %v830_v3 = vld [vmem:[%s5360_s5 + $0xa8] sm:$0xff]  ;;  %v829_v7 = vld [vmem:[%s5360_s5 + $0xa0] sm:$0xff]  ;;  %s4263_s23 = smov 32  }
  0x24   : > { %3463 = vmatpush3.msk.msra.mxu0 %vm515_vm1, %v458_v6  ;;  %v832_v4 = vld [vmem:[%s5360_s5 + $0xb8] sm:$0xff]  ;;  %v930_v59 = vld [vmem:[%s5362_s7] sm:$0xff]  ;;  %vm4995_vm4 = vmpackc.low %vm1366_vm3, %vm1366_vm3 }
  0x25   : > { %3465 = vmatmul.mubr.msk.f32.vlgmr.msra.gmra.mrb[0].mxu0 %vm466_vm0, %v439_v8  ;;  %3717 = vmatprep.subr.bf16.mxu0 %v3716_v38  ;;  %v3736_v6 = vpack.c.bf16 %v832_v4, %v830_v3  ;;  %v831_v8 = vld [vmem:[%s5360_s5 + $0xb0] sm:$0xff]  ;;  %v938_v60 = vld [vmem:[%s5362_s7 + $0x40] sm:$0xff]  ;;  %vm5023_vm7 = vmpackc.low %vm1597_vm5, %vm4258_vm6 }
  0x26   : > { %3467 = vmatprep.mubr.msk.f32.mxu0 %vm466_vm0, %v440_v9  ;;  %3719 = vmatpush1.bf16.msra.mxu0 %v3718_v43  ;;  %v3738_v9 = vpack.c.bf16 %v831_v8, %v829_v7  ;;  %v3750_v7 = vpack.c.bf16 %v938_v60, %v930_v59 }
  0x27   : > { %3721 = vmatprep.subr.bf16.mxu0 %v3720_v46 }
  0x29   : > { %3468 = vmatmul.mubr.msk.f32.gmra.mrb[2].mxu0 %vm466_vm0, %v441_v10 }
  0x2a   : > { %3470 = vmatprep.mubr.msk.f32.mxu0 %vm466_vm0, %v442_v11  ;;  %3723 = vmatpush1.bf16.msra.mxu0 %v3722_v49 }
  0x2b   : > { %3725 = vmatprep.subr.bf16.mxu0 %v3724_v52 }
  0x2d   : > { %3471 = vmatmul.mubr.msk.f32.gmra.mrb[4].mxu0 %vm466_vm0, %v443_v12  ;;  %v3237_v12 = vld [vmem:[%s5377_s2] ss:$0 sm:$0xff]  ;;  %s4259_s2 = smov 96  }
  0x2e   : > { %3473 = vmatprep.mubr.msk.f32.mxu0 %vm466_vm0, %v444_v13  ;;  %3727 = vmatpush1.bf16.msra.mxu0 %v3726_v55 }
  0x2f   : > { %3729 = vmatprep.subr.bf16.mxu0 %v3728_v58 }
  0x31   : > { %3474 = vmatmul.mubr.msk.f32.gmra.mrb[6].mxu0 %vm466_vm0, %v445_v14 }
  0x32   : > { %3476 = vmatprep.mubr.msk.f32.mxu0 %vm466_vm0, %v446_v15  ;;  %3731 = vmatpush1.bf16.msra.mxu0 %v3730_v63  ;;  %v947_v63 = vld [vmem:[%s5362_s7 + $0x88] sm:$0xff] }
  0x33   : > { %3733 = vmatprep.subr.bf16.mxu0 %v3732_v0  ;;  %v955_v0 = vld [vmem:[%s5362_s7 + $0xc8] sm:$0xff] }
  0x35   : > { %3477 = vmatmul.mubr.msk.f32.gmra.mrb[8].mxu0 %vm466_vm0, %v447_v16 }
  0x36   : > { %3479 = vmatprep.mubr.msk.f32.mxu0 %vm466_vm0, %v448_v17  ;;  %3735 = vmatpush1.bf16.msra.mxu0 %v3734_v5 }
  0x37   : > { %3737 = vmatprep.subr.bf16.mxu0 %v3736_v6 }
  0x39   : > { %3480 = vmatmul.mubr.msk.f32.gmra.mrb[10].mxu0 %vm466_vm0, %v449_v18 }
  0x3a   : > { %3482 = vmatprep.mubr.msk.f32.mxu0 %vm466_vm0, %v450_v19  ;;  %3739 = vmatpush1.bf16.msra.mxu0 %v3738_v9  ;;  %v3752_v9 = vpack.c.bf16 %v955_v0, %v947_v63  ;;  %v933_v0 = vld [vmem:[%s5362_s7 + $0x18] sm:$0xff] }
  0x3d   : > { %3483 = vmatmul.mubr.msk.f32.gmra.mrb[12].mxu0 %vm466_vm0, %v451_v20 }
  0x3e   : > { %3485 = vmatprep.mubr.msk.f32.mxu0 %vm466_vm0, %v452_v21 }
  0x41   : > { %3486 = vmatmul.mubr.msk.f32.gmra.mrb[14].mxu0 %vm466_vm0, %v453_v22 }
  0xf8   : > { %v3466_v10 = vpop.f32.mrb[0].mxu0 }
  0xf9   : > { %v585_v11 = vpop.f32.mrb[1].mxu0  ;;  %v591_v15 = vadd.f32 %v3466_v10, %v3237_v12  ;;  %v946_v10 = vld [vmem:[%s5362_s7 + $0x80] sm:$0xff] }
  0xfa   : > { %v586_v16 = vadd.f32 %v3237_v12, %v585_v11  ;;  %v954_v11 = vld [vmem:[%s5362_s7 + $0xc0] sm:$0xff] }
  0xfb   : > { %v665_v21 = vmax.f32 %v591_v15, 0.0 }
  0xfc   : > { %v3469_v13 = vpop.f32.mrb[2].mxu0  ;;  %v664_v24 = vmax.f32 %v586_v16, 0.0 }
  0xfd   : > { %v595_v14 = vpop.f32.mrb[3].mxu0  ;;  %v601_v22 = vadd.f32 %v3469_v13, %v3237_v12  ;;  %v963_v13 = vld [vmem:[%s5362_s7 + $0x108] sm:$0xff] }
  0xfe   : > { %v596_v25 = vadd.f32 %v3237_v12, %v595_v14  ;;  %v971_v14 = vld [vmem:[%s5362_s7 + $0x148] sm:$0xff] }
  0xff   : > { %v667_v33 = vmax.f32 %v601_v22, 0.0  ;;  %v987_v22 = vld [vmem:[%s5362_s7 + $0x1c8] sm:$0xff] }
 0x100   : > { %v3472_v17 = vpop.f32.mrb[4].mxu0  ;;  %v666_v35 = vmax.f32 %v596_v25, 0.0  ;;  %v978_v25 = vld [vmem:[%s5362_s7 + $0x180] sm:$0xff] }
 0x101   : > { %v611_v18 = vadd.f32 %v3472_v17, %v3237_v12  ;;  %v605_v19 = vpop.f32.mrb[5].mxu0  ;;  %v3754_v17 = vpack.c.bf16 %v954_v11, %v946_v10 }
 0x102   : > { %v606_v20 = vadd.f32 %v3237_v12, %v605_v19  ;;  %v962_v19 = vld [vmem:[%s5362_s7 + $0x100] sm:$0xff] }
 0x103   : > { %v669_v23 = vmax.f32 %v611_v18, 0.0  ;;  %v3756_v18 = vpack.c.bf16 %v971_v14, %v963_v13  ;;  %v940_v14 = vld [vmem:[%s5362_s7 + $0x50] sm:$0xff] }
 0x104   : > { %v668_v26 = vmax.f32 %v606_v20, 0.0  ;;  %v3475_v27 = vpop.f32.mrb[6].mxu0  ;;  %v970_v20 = vld [vmem:[%s5362_s7 + $0x140] sm:$0xff] }
 0x105   : > { %v681_v28 = vmax.f32 %v665_v21, %v669_v23  ;;  %v621_v29 = vadd.f32 %v3475_v27, %v3237_v12  ;;  %v615_v30 = vpop.f32.mrb[7].mxu0  ;;  %v979_v21 = vld [vmem:[%s5362_s7 + $0x188] sm:$0xff]  ;;  %v3758_v23 = vpack.c.bf16 %v970_v20, %v962_v19  ;;  %v957_v20 = vld [vmem:[%s5362_s7 + $0xd8] sm:$0xff] }
 0x106   : > { %v680_v31 = vmax.f32 %v664_v24, %v668_v26  ;;  %v616_v32 = vadd.f32 %v3237_v12, %v615_v30  ;;  %v3760_v24 = vpack.c.bf16 %v987_v22, %v979_v21  ;;  %v986_v26 = vld [vmem:[%s5362_s7 + $0x1c0] sm:$0xff]  ;;  %v995_v27 = vld [vmem:[%s5362_s7 + $0x208] sm:$0xff] }
 0x107   : > { %v671_v34 = vmax.f32 %v621_v29, 0.0  ;;  %v3762_v29 = vpack.c.bf16 %v986_v26, %v978_v25  ;;  %v951_v21 = vld [vmem:[%s5362_s7 + $0xa8] sm:$0xff]  ;;  %v948_v25 = vld [vmem:[%s5362_s7 + $0x90] sm:$0xff] }
 0x108   : > { %v670_v36 = vmax.f32 %v616_v32, 0.0  ;;  %v3478_v37 = vpop.f32.mrb[8].mxu0  ;;  %v1002_v32 = vld [vmem:[%s5362_s7 + $0x240] sm:$0xff]  ;;  %v959_v22 = vld [vmem:[%s5362_s7 + $0xe8] sm:$0xff]  ;;  %v956_v26 = vld [vmem:[%s5362_s7 + $0xd0] sm:$0xff] }
 0x109   : > { %v683_v38 = vmax.f32 %v667_v33, %v671_v34  ;;  %v625_v39 = vpop.f32.mrb[9].mxu0  ;;  %v631_v43 = vadd.f32 %v3478_v37, %v3237_v12  ;;  %v1011_v33 = vld [vmem:[%s5362_s7 + $0x288] sm:$0xff]  ;;  %v1010_v37 = vld [vmem:[%s5362_s7 + $0x280] sm:$0xff] }
 0x10a   : > { %v682_v40 = vmax.f32 %v666_v35, %v670_v36  ;;  %v626_v44 = vadd.f32 %v3237_v12, %v625_v39  ;;  %v1019_v34 = vld [vmem:[%s5362_s7 + $0x2c8] sm:$0xff] }
 0x10b   : > { %v673_v49 = vmax.f32 %v631_v43, 0.0  ;;  %v3768_v36 = vpack.c.bf16 %v1019_v34, %v1011_v33  ;;  %v3816_v33 = vpack.c.bf16 %v959_v22, %v951_v21  ;;  %v973_v34 = vld [vmem:[%s5362_s7 + $0x158] sm:$0xff] }
 0x10c   : > { %v3481_v41 = vpop.f32.mrb[10].mxu0  ;;  %v672_v52 = vmax.f32 %v626_v44, 0.0  ;;  %v1035_v44 = vld [vmem:[%s5362_s7 + $0x348] sm:$0xff]  ;;  %v1029_v21 = vld [vmem:[%s5362_s7 + $0x318] sm:$0xff] }
 0x10d   : > { %v635_v42 = vpop.f32.mrb[11].mxu0  ;;  %v641_v50 = vadd.f32 %v3481_v41, %v3237_v12  ;;  %v836_v41 = vld [vmem:[%s5360_s5 + $0xd8] sm:$0xff] }
 0x10e   : > { %v636_v53 = vadd.f32 %v3237_v12, %v635_v42  ;;  %v1027_v42 = vld [vmem:[%s5362_s7 + $0x308] sm:$0xff]  ;;  %v1037_v22 = vld [vmem:[%s5362_s7 + $0x358] sm:$0xff] }
 0x10f   : > { %v675_v1 = vmax.f32 %v641_v50, 0.0  ;;  %v1034_v50 = vld [vmem:[%s5362_s7 + $0x340] sm:$0xff] }
 0x110   : > { %v3484_v45 = vpop.f32.mrb[12].mxu0  ;;  %v674_v4 = vmax.f32 %v636_v53, 0.0  ;;  %v840_v53 = vld [vmem:[%s5360_s5 + $0xf8] sm:$0xff] }
 0x111   : > { %v651_v46 = vadd.f32 %v3484_v45, %v3237_v12  ;;  %v645_v47 = vpop.f32.mrb[13].mxu0  ;;  %v833_v45 = vld [vmem:[%s5360_s5 + $0xc0] sm:$0xff] }
 0x112   : > { %v646_v48 = vadd.f32 %v3237_v12, %v645_v47  ;;  %v3772_v47 = vpack.c.bf16 %v1035_v44, %v1027_v42  ;;  %v966_v44 = vld [vmem:[%s5362_s7 + $0x120] sm:$0xff] }
 0x113   : > { %v677_v51 = vmax.f32 %v651_v46, 0.0  ;;  %v835_v46 = vld [vmem:[%s5360_s5 + $0xd0] sm:$0xff] }
 0x114   : > { %v676_v54 = vmax.f32 %v646_v48, 0.0  ;;  %v3487_v55 = vpop.f32.mrb[14].mxu0  ;;  %v3742_v48 = vpack.c.bf16 %v835_v46, %v833_v45  ;;  %v974_v45 = vld [vmem:[%s5362_s7 + $0x160] sm:$0xff]  ;;  %v981_v46 = vld [vmem:[%s5362_s7 + $0x198] sm:$0xff] }
 0x115   : > { %v685_v56 = vmax.f32 %v673_v49, %v677_v51  ;;  %v661_v57 = vadd.f32 %v3487_v55, %v3237_v12  ;;  %v655_v58 = vpop.f32.mrb[15].mxu0  ;;  %v1026_v49 = vld [vmem:[%s5362_s7 + $0x300] sm:$0xff] }
 0x116   : > { %v684_v61 = vmax.f32 %v672_v52, %v676_v54  ;;  %v656_v62 = vadd.f32 %v3237_v12, %v655_v58  ;;  %v3774_v51 = vpack.c.bf16 %v1034_v50, %v1026_v49  ;;  %v838_v52 = vld [vmem:[%s5360_s5 + $0xe8] sm:$0xff]  ;;  %v839_v58 = vld [vmem:[%s5360_s5 + $0xf0] sm:$0xff] }
 0x117   : > { %v689_v2 = vmax.f32 %v681_v28, %v685_v56  ;;  %v679_v3 = vmax.f32 %v661_v57, 0.0  ;;  %v1003_v28 = vld [vmem:[%s5362_s7 + $0x248] sm:$0xff]  ;;  %v3744_v55 = vpack.c.bf16 %v840_v53, %v838_v52  ;;  %v837_v57 = vld [vmem:[%s5360_s5 + $0xe0] sm:$0xff]  ;;  %v980_v52 = vld [vmem:[%s5362_s7 + $0x190] sm:$0xff] }
 0x118   : > { %v678_v5 = vmax.f32 %v656_v62, 0.0  ;;  %v688_v6 = vmax.f32 %v680_v31, %v684_v61  ;;  %v3764_v30 = vpack.c.bf16 %v1003_v28, %v995_v27  ;;  %v994_v31 = vld [vmem:[%s5362_s7 + $0x200] sm:$0xff]  ;;  %v1043_v54 = vld [vmem:[%s5362_s7 + $0x388] sm:$0xff]  ;;  %v3746_v60 = vpack.c.bf16 %v839_v58, %v837_v57  ;;  %v988_v53 = vld [vmem:[%s5362_s7 + $0x1d0] sm:$0xff] }
 0x119   : > { %v687_v8 = vmax.f32 %v675_v1, %v679_v3  ;;  %v3766_v35 = vpack.c.bf16 %v1002_v32, %v994_v31  ;;  %v1051_v56 = vld [vmem:[%s5362_s7 + $0x3c8] sm:$0xff]  ;;  %v1042_v61 = vld [vmem:[%s5362_s7 + $0x380] sm:$0xff]  ;;  %v941_v1 = vld [vmem:[%s5362_s7 + $0x58] sm:$0xff] }
 0x11a   : > { %v686_v12 = vmax.f32 %v674_v4, %v678_v5  ;;  %3504 = vmatprep.mubr.msk.f32.mxu1 %vm707_vm2, %v688_v6  ;;  %v3776_v59 = vpack.c.bf16 %v1051_v56, %v1043_v54  ;;  %v1050_v62 = vld [vmem:[%s5362_s7 + $0x3c0] sm:$0xff]  ;;  %v3780_v3 = vpack.c.bf16 %v941_v1, %v933_v0  ;;  %v943_v4 = vld [vmem:[%s5362_s7 + $0x68] sm:$0xff]  ;;  %v4255_v6 = vmov 0.0   ;;  %v965_v31 = vld [vmem:[%s5362_s7 + $0x118] sm:$0xff] }
 0x11b   : > { %v691_v15 = vmax.f32 %v683_v38, %v687_v8  ;;  %3505 = vmatmul.mubr.msk.f32.vlgmr.msra.gmra.mrb[0].mxu1 %vm707_vm2, %v689_v2  ;;  %v1018_v38 = vld [vmem:[%s5362_s7 + $0x2c0] sm:$0xff]  ;;  %v3778_v63 = vpack.c.bf16 %v1050_v62, %v1042_v61  ;;  %v935_v2 = vld [vmem:[%s5362_s7 + $0x28] sm:$0xff]  ;;  %917 = vmatprep.mubr.f32.mxu0 %v4255_v6  ;;  %v3788_v42 = vpack.c.bf16 %v973_v34, %v965_v31  ;;  %v997_v58 = vld [vmem:[%s5362_s7 + $0x218] sm:$0xff] }
 0x11c   : > { %v690_v16 = vmax.f32 %v682_v40, %v686_v12  ;;  %3751 = vmatpush1.bf16.msra.mxu1 %v3750_v7  ;;  %v3770_v39 = vpack.c.bf16 %v1018_v38, %v1010_v37  ;;  %v834_v40 = vld [vmem:[%s5360_s5 + $0xc8] sm:$0xff]  ;;  %v3812_v5 = vpack.c.bf16 %v943_v4, %v935_v2  ;;  %v3255_v7 = vld [vmem:[%s5359_s4] ss:$0 sm:$0xff]  ;;  %v932_v12 = vld [vmem:[%s5362_s7 + $0x10] sm:$0xff]  ;;  %v3786_v37 = vpack.c.bf16 %v956_v26, %v948_v25 }
 0x11d   : > { %3753 = vmatprep.subr.bf16.mxu1 %v3752_v9  ;;  %v3740_v43 = vpack.c.bf16 %v836_v41, %v834_v40  ;;  %v972_v40 = vld [vmem:[%s5362_s7 + $0x150] sm:$0xff]  ;;  %v991_v49 = vld [vmem:[%s5362_s7 + $0x1e8] sm:$0xff]  ;;  %v982_v56 = vld [vmem:[%s5362_s7 + $0x1a0] sm:$0xff]  ;;  %v3794_v62 = vpack.c.bf16 %v988_v53, %v980_v52 }
 0x11e   : > { %3507 = vmatprep.mubr.msk.f32.mxu1 %vm707_vm2, %v690_v16  ;;  %v942_v16 = vld [vmem:[%s5362_s7 + $0x60] sm:$0xff]  ;;  %v1007_v61 = vld [vmem:[%s5362_s7 + $0x268] sm:$0xff]  ;;  %v996_v0 = vld [vmem:[%s5362_s7 + $0x210] sm:$0xff] }
 0x11f   : > { %3508 = vmatmul.mubr.msk.f32.gmra.mrb[2].mxu1 %vm707_vm2, %v691_v15  ;;  %3741 = vmatprep.subr.bf16.mxu0 %v3740_v43  ;;  %v934_v15 = vld [vmem:[%s5362_s7 + $0x20] sm:$0xff]  ;;  %v1004_v1 = vld [vmem:[%s5362_s7 + $0x250] sm:$0xff]  ;;  %v1045_v34 = vld [vmem:[%s5362_s7 + $0x398] sm:$0xff] }
 0x120   : > { %3755 = vmatpush1.bf16.msra.mxu1 %v3754_v17  ;;  %3743 = vmatpush1.bf16.msra.mxu0 %v3742_v48  ;;  %v983_v48 = vld [vmem:[%s5362_s7 + $0x1a8] sm:$0xff]  ;;  %v990_v57 = vld [vmem:[%s5362_s7 + $0x1e0] sm:$0xff]  ;;  %v936_v52 = vld [vmem:[%s5362_s7 + $0x30] sm:$0xff] }
 0x121   : > { %3757 = vmatprep.subr.bf16.mxu1 %v3756_v18  ;;  %3745 = vmatprep.subr.bf16.mxu0 %v3744_v55  ;;  %v949_v18 = vld [vmem:[%s5362_s7 + $0x98] sm:$0xff]  ;;  %v3824_v55 = vpack.c.bf16 %v991_v49, %v983_v48  ;;  %v998_v4 = vld [vmem:[%s5362_s7 + $0x220] sm:$0xff]  ;;  %v944_v53 = vld [vmem:[%s5362_s7 + $0x70] sm:$0xff] }
 0x122   : > { %1122 = vmatprep.mubr.f32.mxu1 %v4255_v6  ;;  %v3784_v32 = vpack.c.bf16 %v957_v20, %v949_v18  ;;  %v1022_v20 = vld [vmem:[%s5362_s7 + $0x2e0] sm:$0xff]  ;;  %v945_v48 = vld [vmem:[%s5362_s7 + $0x78] sm:$0xff] }
 0x124   : > { %3759 = vmatpush1.bf16.msra.mxu1 %v3758_v23  ;;  %3747 = vmatpush1.bf16.msra.mxu0 %v3746_v60  ;;  %v3782_v23 = vpack.c.bf16 %v940_v14, %v932_v12  ;;  %v999_v60 = vld [vmem:[%s5362_s7 + $0x228] sm:$0xff] }
 0x125   : > { %3761 = vmatprep.subr.bf16.mxu1 %v3760_v24  ;;  %3781 = vmatprep.subr.bf16.mxu0 %v3780_v3  ;;  %v3814_v24 = vpack.c.bf16 %v942_v16, %v934_v15  ;;  %v3828_v3 = vpack.c.bf16 %v1007_v61, %v999_v60  ;;  %v1023_v12 = vld [vmem:[%s5362_s7 + $0x2e8] sm:$0xff]  ;;  %v1012_v15 = vld [vmem:[%s5362_s7 + $0x290] sm:$0xff]  ;;  %v969_v60 = vld [vmem:[%s5362_s7 + $0x138] sm:$0xff] }
 0x126   : > { %v1020_v16 = vld [vmem:[%s5362_s7 + $0x2d0] sm:$0xff]  ;;  %v977_v61 = vld [vmem:[%s5362_s7 + $0x178] sm:$0xff] }
 0x127   : > { %v3802_v25 = vpack.c.bf16 %v1020_v16, %v1012_v15  ;;  %v1000_v15 = vld [vmem:[%s5362_s7 + $0x230] sm:$0xff] }
 0x128   : > { %3763 = vmatpush1.bf16.msra.mxu1 %v3762_v29  ;;  %v950_v29 = vld [vmem:[%s5362_s7 + $0xa0] sm:$0xff]  ;;  %v1008_v16 = vld [vmem:[%s5362_s7 + $0x270] sm:$0xff] }
 0x129   : > { %3765 = vmatprep.subr.bf16.mxu1 %v3764_v30  ;;  %v958_v30 = vld [vmem:[%s5362_s7 + $0xe0] sm:$0xff] }
 0x12a   : > { %v3818_v38 = vpack.c.bf16 %v958_v30, %v950_v29  ;;  %v1036_v29 = vld [vmem:[%s5362_s7 + $0x350] sm:$0xff]  ;;  %v3804_v30 = vpack.c.bf16 %v1037_v22, %v1029_v21 }
 0x12b   : > { %v1016_v21 = vld [vmem:[%s5362_s7 + $0x2b0] sm:$0xff] }
 0x12c   : > { %3767 = vmatpush1.bf16.msra.mxu1 %v3766_v35  ;;  %v967_v35 = vld [vmem:[%s5362_s7 + $0x128] sm:$0xff]  ;;  %v1024_v22 = vld [vmem:[%s5362_s7 + $0x2f0] sm:$0xff] }
 0x12d   : > { %3769 = vmatprep.subr.bf16.mxu1 %v3768_v36  ;;  %v975_v36 = vld [vmem:[%s5362_s7 + $0x168] sm:$0xff] }
 0x12e   : > { %v3820_v43 = vpack.c.bf16 %v975_v36, %v967_v35  ;;  %v1053_v35 = vld [vmem:[%s5362_s7 + $0x3d8] sm:$0xff]  ;;  %v1047_v36 = vld [vmem:[%s5362_s7 + $0x3a8] sm:$0xff] }
 0x130   : > { %3771 = vmatpush1.bf16.msra.mxu1 %v3770_v39  ;;  %v964_v39 = vld [vmem:[%s5362_s7 + $0x110] sm:$0xff] }
 0x131   : > { %3773 = vmatprep.subr.bf16.mxu1 %v3772_v47  ;;  %v989_v47 = vld [vmem:[%s5362_s7 + $0x1d8] sm:$0xff]  ;;  %v3790_v50 = vpack.c.bf16 %v972_v40, %v964_v39  ;;  %v1044_v40 = vld [vmem:[%s5362_s7 + $0x390] sm:$0xff] }
 0x132   : > { %v3792_v54 = vpack.c.bf16 %v989_v47, %v981_v46  ;;  %v1054_v46 = vld [vmem:[%s5362_s7 + $0x3e0] sm:$0xff]  ;;  %v937_v47 = vld [vmem:[%s5362_s7 + $0x38] sm:$0xff] }
 0x134   : > { %3775 = vmatpush1.bf16.msra.mxu1 %v3774_v51  ;;  %v3822_v51 = vpack.c.bf16 %v974_v45, %v966_v44  ;;  %v1052_v44 = vld [vmem:[%s5362_s7 + $0x3d0] sm:$0xff]  ;;  %v1046_v45 = vld [vmem:[%s5362_s7 + $0x3a0] sm:$0xff] }
 0x135   : > { %3777 = vmatprep.subr.bf16.mxu1 %v3776_v59  ;;  %v1005_v59 = vld [vmem:[%s5362_s7 + $0x258] sm:$0xff]  ;;  %v3810_v49 = vpack.c.bf16 %v1052_v44, %v1044_v40  ;;  %v841_v40 = vld [vmem:[%s5361_s6] sm:$0x3] }
 0x136   : > { %v3796_v2 = vpack.c.bf16 %v1005_v59, %v997_v58  ;;  %v952_v58 = vld [vmem:[%s5362_s7 + $0xb0] sm:$0xff] }
 0x137   : > { %v960_v59 = vld [vmem:[%s5362_s7 + $0xf0] sm:$0xff] }
 0x138   : > { %3779 = vmatpush1.bf16.msra.mxu1 %v3778_v63  ;;  %v3826_v63 = vpack.c.bf16 %v990_v57, %v982_v56  ;;  %v3846_v56 = vpack.c.bf16 %v944_v53, %v936_v52 }
 0x139   : > { %3813 = vmatprep.subr.bf16.mxu1 %v3812_v5  ;;  %v1006_v5 = vld [vmem:[%s5362_s7 + $0x260] sm:$0xff] }
 0x13a   : > { %v3830_v14 = vpack.c.bf16 %v1006_v5, %v998_v4 }
 0x1ee   : > { %v3506_v8 = vpop.f32.mrb[0].mxu1 }
 0x1ef   : > { %v4679_v9 = vadd.f32 %v3506_v8, %v3255_v7  ;;  %v786_v10 = vpop.f32.mrb[1].mxu1  ;;  %v1021_v8 = vld [vmem:[%s5362_s7 + $0x2d8] sm:$0xff] }
 0x1f0   : > { %v4681_v11 = vadd.f32 %v3255_v7, %v786_v10  ;;  %v1015_v10 = vld [vmem:[%s5362_s7 + $0x2a8] sm:$0xff] }
 0x1f1   : > { %v3832_v18 = vpack.c.bf16 %v1023_v12, %v1015_v10  ;;  %v1001_v10 = vld [vmem:[%s5362_s7 + $0x238] sm:$0xff] }
 0x1f2   : > { %v3509_v13 = vpop.f32.mrb[2].mxu1  ;;  %v1009_v12 = vld [vmem:[%s5362_s7 + $0x278] sm:$0xff] }
 0x1f3   : > { %v796_v17 = vpop.f32.mrb[3].mxu1  ;;  %v802_v27 = vadd.f32 %v3509_v13, %v3255_v7  ;;  %v3798_v13 = vpack.c.bf16 %v1004_v1, %v996_v0  ;;  %v968_v0 = vld [vmem:[%s5362_s7 + $0x130] sm:$0xff] }
 0x1f4   : > { %v797_v19 = vadd.f32 %v3255_v7, %v796_v17  ;;  %v1013_v7 = vld [vmem:[%s5362_s7 + $0x298] sm:$0xff]  ;;  %v976_v1 = vld [vmem:[%s5362_s7 + $0x170] sm:$0xff] }
 0x1f5   : > { %v4741_v41 = vmax.f32 %v802_v27, 0.0  ;;  %v3800_v17 = vpack.c.bf16 %v1021_v8, %v1013_v7  ;;  %v1028_v27 = vld [vmem:[%s5362_s7 + $0x310] sm:$0xff]  ;;  %v3854_v4 = vpack.c.bf16 %v976_v1, %v968_v0 }
 0x1f6   : > { %v4713_v28 = vmax.f32 %v797_v19, 0.0  ;;  %v1014_v19 = vld [vmem:[%s5362_s7 + $0x2a0] sm:$0xff]  ;;  %v984_v7 = vld [vmem:[%s5362_s7 + $0x1b0] sm:$0xff] }
 0x1f7   : > { %v3834_v26 = vpack.c.bf16 %v1022_v20, %v1014_v19  ;;  %v992_v8 = vld [vmem:[%s5362_s7 + $0x1f0] sm:$0xff]  ;;  %v3862_v19 = vpack.c.bf16 %v1008_v16, %v1000_v15 }
 0x1f8   : > { %918 = vmatmul.mubr.f32.vlgmr.msra.gmra.mrb[16].mxu0 %v4713_v28  ;;  %1123 = vmatmul.mubr.f32.vlgmr.msra.gmra.mrb[4].mxu1 %v4713_v28 }
 0x1f9   : > { %3783 = vmatpush1.bf16.msra.mxu0 %v3782_v23  ;;  %3815 = vmatpush1.bf16.msra.mxu1 %v3814_v24  ;;  %v1031_v23 = vld [vmem:[%s5362_s7 + $0x328] sm:$0xff] }
 0x1fa   : > { %923 = vmatprep.mubr.f32.mxu0 %v4255_v6  ;;  %1128 = vmatprep.mubr.f32.mxu1 %v4255_v6  ;;  %v1039_v24 = vld [vmem:[%s5362_s7 + $0x368] sm:$0xff] }
 0x1fb   : > { %3785 = vmatprep.subr.bf16.mxu0 %v3784_v32  ;;  %3817 = vmatprep.subr.bf16.mxu1 %v3816_v33  ;;  %v3836_v31 = vpack.c.bf16 %v1039_v24, %v1031_v23  ;;  %v1030_v32 = vld [vmem:[%s5362_s7 + $0x320] sm:$0xff]  ;;  %v1033_v23 = vld [vmem:[%s5362_s7 + $0x338] sm:$0xff] }
 0x1fc   : > { %924 = vmatmul.mubr.f32.gmra.mrb[18].mxu0 %v4741_v41  ;;  %1129 = vmatmul.mubr.f32.gmra.mrb[6].mxu1 %v4741_v41  ;;  %v1038_v33 = vld [vmem:[%s5362_s7 + $0x360] sm:$0xff]  ;;  %v1041_v24 = vld [vmem:[%s5362_s7 + $0x378] sm:$0xff] }
 0x1fd   : > { %3787 = vmatpush1.bf16.msra.mxu0 %v3786_v37  ;;  %3819 = vmatpush1.bf16.msra.mxu1 %v3818_v38  ;;  %v1055_v37 = vld [vmem:[%s5362_s7 + $0x3e8] sm:$0xff]  ;;  %v3806_v38 = vpack.c.bf16 %v1036_v29, %v1028_v27  ;;  %v3838_v39 = vpack.c.bf16 %v1038_v33, %v1030_v32  ;;  %v1032_v27 = vld [vmem:[%s5362_s7 + $0x330] sm:$0xff] }
 0x1fe   : > { %3789 = vmatprep.subr.bf16.mxu0 %v3788_v42  ;;  %3821 = vmatprep.subr.bf16.mxu1 %v3820_v43  ;;  %v3808_v42 = vpack.c.bf16 %v1053_v35, %v1045_v34  ;;  %v3840_v43 = vpack.c.bf16 %v1055_v37, %v1047_v36  ;;  %v1040_v29 = vld [vmem:[%s5362_s7 + $0x370] sm:$0xff]  ;;  %v843_v37 = vlaneseq }
 0x1ff   : > { %1199 = vmatprep.mubr.f32.mxu0 %v4255_v6  ;;  %1276 = vmatprep.mubr.f32.mxu1 %v4255_v6  ;;  %v3870_v32 = vpack.c.bf16 %v1040_v29, %v1032_v27  ;;  %v1048_v34 = vld [vmem:[%s5362_s7 + $0x3b0] sm:$0xff]  ;;  %v2980_v27 = vld [vmem:[%s5364_s9 + $0x78] sm:$0xff] }
 0x200   : > { %v1056_v35 = vld [vmem:[%s5362_s7 + $0x3f0] sm:$0xff] }
 0x201   : > { %3791 = vmatpush1.bf16.msra.mxu0 %v3790_v50  ;;  %3823 = vmatpush1.bf16.msra.mxu1 %v3822_v51  ;;  %v3842_v50 = vpack.c.bf16 %v1054_v46, %v1046_v45  ;;  %v3844_v51 = vpack.c.bf16 %v945_v48, %v937_v47  ;;  %v3874_v36 = vpack.c.bf16 %v1056_v35, %v1048_v34 }
 0x202   : > { %3793 = vmatprep.subr.bf16.mxu0 %v3792_v54  ;;  %3825 = vmatprep.subr.bf16.mxu1 %v3824_v55  ;;  %v953_v54 = vld [vmem:[%s5362_s7 + $0xb8] sm:$0xff] }
 0x203   : > { %v961_v55 = vld [vmem:[%s5362_s7 + $0xf8] sm:$0xff] }
 0x204   : > { %v3848_v57 = vpack.c.bf16 %v961_v55, %v953_v54 }
 0x205   : > { %3795 = vmatpush1.bf16.msra.mxu0 %v3794_v62  ;;  %3827 = vmatpush1.bf16.msra.mxu1 %v3826_v63  ;;  %v3850_v62 = vpack.c.bf16 %v960_v59, %v952_v58  ;;  %v3852_v63 = vpack.c.bf16 %v977_v61, %v969_v60 }
 0x206   : > { %3797 = vmatprep.subr.bf16.mxu0 %v3796_v2  ;;  %3829 = vmatprep.subr.bf16.mxu1 %v3828_v3  ;;  %v985_v2 = vld [vmem:[%s5362_s7 + $0x1b8] sm:$0xff] }
 0x207   : > { %v993_v3 = vld [vmem:[%s5362_s7 + $0x1f8] sm:$0xff] }
 0x208   : > { %v3856_v5 = vpack.c.bf16 %v993_v3, %v985_v2 }
 0x209   : > { %3799 = vmatpush1.bf16.msra.mxu0 %v3798_v13  ;;  %3831 = vmatpush1.bf16.msra.mxu1 %v3830_v14  ;;  %v3858_v13 = vpack.c.bf16 %v992_v8, %v984_v7  ;;  %v3860_v14 = vpack.c.bf16 %v1009_v12, %v1001_v10 }
 0x20a   : > { %3801 = vmatprep.subr.bf16.mxu0 %v3800_v17  ;;  %3833 = vmatprep.subr.bf16.mxu1 %v3832_v18  ;;  %v1017_v17 = vld [vmem:[%s5362_s7 + $0x2b8] sm:$0xff] }
 0x20b   : > { %v1025_v18 = vld [vmem:[%s5362_s7 + $0x2f8] sm:$0xff] }
 0x20c   : > { %v3864_v20 = vpack.c.bf16 %v1025_v18, %v1017_v17 }
 0x20d   : > { %3803 = vmatpush1.bf16.msra.mxu0 %v3802_v25  ;;  %3835 = vmatpush1.bf16.msra.mxu1 %v3834_v26  ;;  %v3866_v25 = vpack.c.bf16 %v1024_v22, %v1016_v21  ;;  %v3868_v26 = vpack.c.bf16 %v1041_v24, %v1033_v23 }
 0x20e   : > { %3805 = vmatprep.subr.bf16.mxu0 %v3804_v30  ;;  %3837 = vmatprep.subr.bf16.mxu1 %v3836_v31  ;;  %v1049_v30 = vld [vmem:[%s5362_s7 + $0x3b8] sm:$0xff] }
 0x20f   : > { %v1057_v31 = vld [vmem:[%s5362_s7 + $0x3f8] sm:$0xff] }
 0x210   : > { %v3872_v33 = vpack.c.bf16 %v1057_v31, %v1049_v30 }
 0x211   : > { %3807 = vmatpush1.bf16.msra.mxu0 %v3806_v38  ;;  %3839 = vmatpush1.bf16.msra.mxu1 %v3838_v39  ;;  %v844_v38 = vshrl.u32 %v843_v37, 7 }
 0x212   : > { %3809 = vmatprep.subr.bf16.mxu0 %v3808_v42  ;;  %3841 = vmatprep.subr.bf16.mxu1 %v3840_v43 }
 0x213   : > { %v845_v39 = vsub.s32 0, %v844_v38  ;;  %v849_v43 = vsub.s32 1, %v844_v38 }
 0x215   : > { %3811 = vmatpush1.bf16.msra.mxu0 %v3810_v49  ;;  %3843 = vmatpush1.bf16.msra.mxu1 %v3842_v50  ;;  %v846_v42 = vrot.slane %v841_v40, %v845_v39  ;;  %v850_v48 = vrot.slane %v841_v40, %v849_v43 }
 0x216   : > { %3845 = vmatprep.subr.bf16.mxu0 %v3844_v51 }
 0x218   : > { %1200 = vmatmul.mubr.f32.vlgmr.msra.gmra.mrb[20].mxu0 %v4713_v28  ;;  %1277 = vmatmul.mubr.f32.vlgmr.msra.gmra.mrb[8].mxu1 %v4713_v28 }
 0x219   : > { %3847 = vmatpush1.bf16.msra.mxu0 %v3846_v56  ;;  %1205 = vmatprep.mubr.f32.mxu0 %v4255_v6 }
 0x21a   : > { %1282 = vmatprep.mubr.f32.mxu1 %v4255_v6  ;;  %3849 = vmatprep.subr.bf16.mxu0 %v3848_v57 }
 0x21c   : > { %1206 = vmatmul.mubr.f32.gmra.mrb[22].mxu0 %v4741_v41  ;;  %1283 = vmatmul.mubr.f32.gmra.mrb[10].mxu1 %v4741_v41 }
 0x21d   : > { %3851 = vmatpush1.bf16.msra.mxu0 %v3850_v62  ;;  %1353 = vmatprep.mubr.f32.mxu0 %v4255_v6 }
 0x21e   : > { %3853 = vmatprep.subr.bf16.mxu0 %v3852_v63 }
 0x221   : > { %3855 = vmatpush1.bf16.msra.mxu0 %v3854_v4 }
 0x222   : > { %3857 = vmatprep.subr.bf16.mxu0 %v3856_v5 }
 0x225   : > { %3859 = vmatpush1.bf16.msra.mxu0 %v3858_v13 }
 0x226   : > { %3861 = vmatprep.subr.bf16.mxu0 %v3860_v14 }
 0x229   : > { %3863 = vmatpush1.bf16.msra.mxu0 %v3862_v19 }
 0x22a   : > { %3865 = vmatprep.subr.bf16.mxu0 %v3864_v20 }
 0x22d   : > { %3867 = vmatpush1.bf16.msra.mxu0 %v3866_v25 }
 0x22e   : > { %3869 = vmatprep.subr.bf16.mxu0 %v3868_v26 }
 0x231   : > { %3871 = vmatpush1.bf16.msra.mxu0 %v3870_v32 }
 0x232   : > { %3873 = vmatprep.subr.bf16.mxu0 %v3872_v33 }
 0x235   : > { %3875 = vmatpush1.bf16.msra.mxu0 %v3874_v36 }
 0x238   : > { %1354 = vmatmul.mubr.f32.vlgmr.msra.gmra.mrb[24].mxu0 %v4713_v28 }
 0x239   : > { %1359 = vmatprep.mubr.f32.mxu0 %v4255_v6 }
 0x23c   : > { %1360 = vmatmul.mubr.f32.gmra.mrb[26].mxu0 %v4741_v41 }
 0x2cb   : > { %v919_v44 = vpop.f32.mrb[16].mxu0  ;;  %v1124_v45 = vpop.f32.mrb[4].mxu1 }
 0x2cc   : > { %v4984_v46 = vadd.f32 %v919_v44, %v846_v42  ;;  %v921_v47 = vpop.f32.mrb[17].mxu0  ;;  %v1126_v28 = vpop.f32.mrb[5].mxu1 }
 0x2cd   : > { %v922_v54 = vadd.f32 %v921_v47, %v850_v48 }
 0x2ce   : > { %3514 = vmatprep.mubr.msk.f32.mxu1 %vm1366_vm3, %v4984_v46 }
 0x2cf   : > { %v925_v41 = vpop.f32.mrb[18].mxu0  ;;  %v1130_v49 = vpop.f32.mrb[6].mxu1 }
 0x2d0   : > { %v4988_v50 = vadd.f32 %v925_v41, %v846_v42  ;;  %v4990_v51 = vpack.c.bf16 %v1130_v49, %v1124_v45  ;;  %v927_v52 = vpop.f32.mrb[19].mxu0  ;;  %v1132_v53 = vpop.f32.mrb[7].mxu1 }
 0x2d1   : > { %v928_v55 = vadd.f32 %v927_v52, %v850_v48  ;;  %v3888_v56 = vpack.c.bf16 %v1132_v53, %v1126_v28 }
 0x2d2   : > { %1480 = vrot.lane.b32.xlu1 %v4988_v50, %s4256_s1 }
 0x2d3   : > { %v4999_v58 = vpack.i.bf16 %v928_v55, %v922_v54  ;;  %v3876_v59 = vpack.c.bf16 %v928_v55, %v922_v54 }
 0x2d5   : > { %4093 = vrot.lane.b32.xlu0 %v4999_v58, %s4256_s1  ;;  %3878 = vmatprep.subr.msk.bf16.mxu1 %vm4995_vm4, %v3876_v59 }
 0x2d6   : > { %4098 = vrot.lane.b32.xlu1 %v4999_v58, %s4257_s21  ;;  %3881 = vmatpush3.bf16.xpose.msk.msra.mxu1 %vm4995_vm4, %v3876_v59 }
 0x2d9   : > { %1478 = vrot.lane.b32.xlu0 %v4984_v46, %s4256_s1 }
 0x2da   : > { %1961 = vrot.lane.b32.xlu1 %v4988_v50, %s4257_s21 }
 0x2dd   : > { %1959 = vrot.lane.b32.xlu0 %v4984_v46, %s4257_s21  ;;  %3515 = vmatmul.mubr.msk.f32.vlgmr.msra.gmra.mrb[12].mxu1 %vm1366_vm3, %v4988_v50 }
 0x2eb   : > { %v1201_v60 = vpop.f32.mrb[20].mxu0  ;;  %v1278_v61 = vpop.f32.mrb[8].mxu1 }
 0x2ec   : > { %v1203_v62 = vpop.f32.mrb[21].mxu0  ;;  %v1280_v63 = vpop.f32.mrb[9].mxu1 }
 0x2ef   : > { %v1207_v0 = vpop.f32.mrb[22].mxu0  ;;  %v1284_v1 = vpop.f32.mrb[10].mxu1 }
 0x2f0   : > { %v5012_v2 = vpack.c.bf16 %v1207_v0, %v1201_v60  ;;  %v5014_v3 = vpack.c.bf16 %v1284_v1, %v1278_v61  ;;  %v1209_v4 = vpop.f32.mrb[23].mxu0  ;;  %v1286_v5 = vpop.f32.mrb[11].mxu1 }
 0x2f1   : > { %v3918_v7 = vpack.c.bf16 %v1209_v4, %v1203_v62  ;;  %v5016_v8 = vpack.c.bf16 %v1286_v5, %v1280_v63 }
 0x30b   : > { %v1355_v10 = vpop.f32.mrb[24].mxu0 }
 0x30c   : > { %v1357_v12 = vpop.f32.mrb[25].mxu0 }
 0x30f   : > { %v1361_v13 = vpop.f32.mrb[26].mxu0 }
 0x310   : > { %v5018_v14 = vpack.c.bf16 %v1361_v13, %v1355_v10  ;;  %v1363_v15 = vpop.f32.mrb[27].mxu0 }
 0x311   : > { %v5020_v16 = vpack.c.bf16 %v1363_v15, %v1357_v12 }
 0x344   : > { %v1481_v17 = vpop.permute.xlu1 %1480 }
 0x347   : > { %v4094_v18 = vpop.permute.xlu0 %4093 }
 0x348   : > { %v4096_v19 = vunpack.i.h.bf16 %v4094_v18  ;;  %v4095_v20 = vunpack.i.l.bf16 %v4094_v18  ;;  %v4099_v21 = vpop.permute.xlu1 %4098 }
 0x349   : > { %v4101_v22 = vunpack.i.h.bf16 %v4099_v21  ;;  %v4100_v23 = vunpack.i.l.bf16 %v4099_v21 }
 0x34a   : > { %v3882_v24 = vpack.c.bf16 %v4096_v19, %v4095_v20 }
 0x34b   : > { %v3912_v25 = vpack.c.bf16 %v4101_v22, %v4100_v23  ;;  %v1479_v26 = vpop.permute.xlu0 %1478 }
 0x34c   : > { %3884 = vmatprep.subr.msk.bf16.mxu1 %vm4995_vm4, %v3882_v24  ;;  %3521 = vmatprep.mubr.msk.f32.mxu1 %vm1366_vm3, %v1479_v26  ;;  %v1962_v30 = vpop.permute.xlu1 %1961 }
 0x34d   : > { %3887 = vmatpush3.bf16.xpose.msk.msra.mxu1 %vm4995_vm4, %v3882_v24  ;;  %3914 = vmatprep.subr.msk.bf16.mxu0 %vm4995_vm4, %v3912_v25 }
 0x34e   : > { %3890 = vmatprep.subr.msk.bf16.mxu1 %vm5023_vm7, %v3888_v56  ;;  %3917 = vmatpush3.bf16.xpose.msk.msra.mxu0 %vm4995_vm4, %v3912_v25 }
 0x34f   : > { %3920 = vmatprep.subr.msk.bf16.mxu0 %vm5023_vm7, %v3918_v7  ;;  %v1960_v29 = vpop.permute.xlu0 %1959 }
 0x350   : > { %3556 = vmatprep.mubr.msk.f32.mxu0 %vm1366_vm3, %v1960_v29 }
 0x354   : > { %3522 = vmatmul.mubr.msk.f32.vlgmr.msra.gmra.mrb[14].mxu1 %vm1366_vm3, %v1481_v17 }
 0x355   : > { %3893 = vmatpush3.bf16.msk.msra.mxu1 %vm5023_vm7, %v3888_v56  ;;  %3557 = vmatmul.mubr.msk.f32.vlgmr.msra.gmra.mrb[28].mxu0 %vm1366_vm3, %v1962_v30 }
 0x356   : > { %3896 = vmatprep.subr.msk.bf16.mxu1 %vm5023_vm7, %v4990_v51  ;;  %3923 = vmatpush3.bf16.msk.msra.mxu0 %vm5023_vm7, %v3918_v7 }
 0x3b0   : > { %v3516_v31 = vpop.f32.mrb[12].mxu1 }
 0x3b1   : > { %v1445_v32 = vpop.f32.mrb[13].mxu1  ;;  %v1459_v40 = vsel %vm1458_vm8, %v3516_v31, -inf }
 0x3b2   : > { %v1455_v39 = vsel %vm1454_vm9, %v1445_v32, -inf }
 0x427   : > { %v3523_v33 = vpop.f32.mrb[14].mxu1 }
 0x428   : > { %v1560_v34 = vpop.f32.mrb[15].mxu1  ;;  %v3558_v35 = vpop.f32.mrb[28].mxu0  ;;  %v1572_v36 = vsel %vm1458_vm8, %v3523_v33, -inf }
 0x429   : > { %v2041_v37 = vpop.f32.mrb[29].mxu0  ;;  %1573 = vmax.xlane.f32.xlu1 %v1572_v36  ;;  %v1569_v38 = vsel %vm1454_vm9, %v1560_v34, -inf  ;;  %v2053_v42 = vsel %vm1458_vm8, %v3558_v35, -inf }
 0x42a   : > { %1570 = vmax.xlane.f32.xlu0 %v1569_v38  ;;  %v2050_v43 = vsel %vm1454_vm9, %v2041_v37, -inf }
 0x42e   : > { %1456 = vmax.xlane.f32.xlu0 %v1455_v39 }
 0x432   : > { %1460 = vmax.xlane.f32.xlu0 %v1459_v40 }
 0x436   : > { %2054 = vmax.xlane.f32.xlu0 %v2053_v42 }
 0x43a   : > { %4103 = vrot.lane.b32.xlu1 %v4999_v58, %s4259_s2 }
 0x45e   : > { %2051 = vmax.xlane.f32.xlu1 %v2050_v43 }
 0x4b6   : > { %v1574_v45 = vpop.xlane.xlu1 %1573 }
 0x4b7   : > { %v1571_v44 = vpop.xlane.xlu0 %1570  ;;  %v1576_v48 = vsub.f32 %v3523_v33, %v1574_v45 }
 0x4b8   : > { %v1575_v63 = vsub.f32 %v1560_v34, %v1571_v44 }
 0x4b9   : > { %v1579_v53 = vmul.f32 1.442695, %v1576_v48 }
 0x4ba   : > { %v1577_v0 = vmul.f32 1.442695, %v1575_v63  ;;  %v4104_v15 = vpop.permute.xlu1 %4103 }
 0x4bb   : > { %v1457_v47 = vpop.xlane.xlu0 %1456  ;;  %v4106_v36 = vunpack.i.h.bf16 %v4104_v15 }
 0x4bc   : > { %v1462_v28 = vsub.f32 %v1445_v32, %v1457_v47 }
 0x4be   : > { %v1464_v41 = vmul.f32 1.442695, %v1462_v28 }
 0x4bf   : > { %v1461_v49 = vpop.xlane.xlu0 %1460 }
 0x4c0   : > { %4127 = vpow2.f32 %v1464_v41  ;;  %v1463_v52 = vsub.f32 %v3516_v31, %v1461_v49 }
 0x4c2   : > { %v1466_v54 = vmul.f32 1.442695, %v1463_v52 }
 0x4c3   : > { %v2055_v1 = vpop.xlane.xlu0 %2054 }
 0x4c4   : > { %4129 = vpow2.f32 %v1466_v54  ;;  %v2057_v4 = vsub.f32 %v3558_v35, %v2055_v1 }
 0x4c5   : > { %4131 = vpow2.f32 %v1579_v53 }
 0x4c6   : > { %4133 = vpow2.f32 %v1577_v0  ;;  %v2060_v5 = vmul.f32 1.442695, %v2057_v4 }
 0x4c8   : > { %4135 = vpow2.f32 %v2060_v5 }
 0x4ca   : > { %v4128_v55 = vpop.eup %4127 }
 0x4cb   : > { %v1468_v56 = vsel %vm1454_vm9, %v4128_v55, 0.0 }
 0x4cc   : > { %1469 = vadd.xlane.f32.xlu1 %v1468_v56 }
 0x4ce   : > { %v5059_v59 = vpop.eup %4129 }
 0x4cf   : > { %v1471_v60 = vsel %vm1458_vm8, %v5059_v59, 0.0  ;;  %v4132_v61 = vpop.eup %4131 }
 0x4d0   : > { %1472 = vadd.xlane.f32.xlu0 %v1471_v60  ;;  %v1584_v62 = vsel %vm1458_vm8, %v4132_v61, 0.0  ;;  %v4134_v7 = vpop.eup %4133 }
 0x4d1   : > { %v1581_v10 = vsel %vm1454_vm9, %v4134_v7, 0.0 }
 0x4d2   : > { %v5068_v12 = vpop.eup %4135 }
 0x4d3   : > { %v2065_v13 = vsel %vm1458_vm8, %v5068_v12, 0.0 }
 0x4d4   : > { %1585 = vadd.xlane.f32.xlu0 %v1584_v62 }
 0x4dd   : > { %1760 = vrot.lane.b32.xlu1 %v4984_v46, %s4259_s2 }
 0x4ea   : > { %4108 = vrot.lane.b32.xlu0 %v4999_v58, %s4260_s22 }
 0x4eb   : > { %v2052_v17 = vpop.xlane.xlu1 %2051 }
 0x4ec   : > { %v2056_v18 = vsub.f32 %v2041_v37, %v2052_v17  ;;  %v4105_v37 = vunpack.i.l.bf16 %v4104_v15 }
 0x4ee   : > { %v2058_v19 = vmul.f32 1.442695, %v2056_v18  ;;  %v3900_v42 = vpack.c.bf16 %v4106_v36, %v4105_v37 }
 0x4f0   : > { %4137 = vpow2.f32 %v2058_v19 }
 0x4fa   : > { %v4138_v20 = vpop.eup %4137 }
 0x4fb   : > { %v2062_v21 = vsel %vm1454_vm9, %v4138_v20, 0.0 }
 0x501   : > { %1582 = vadd.xlane.f32.xlu1 %v1581_v10 }
 0x509   : > { %2066 = vadd.xlane.f32.xlu0 %v2065_v13 }
 0x512   : > { %1762 = vrot.lane.b32.xlu1 %v4988_v50, %s4259_s2 }
 0x51f   : > { %2158 = vrot.lane.b32.xlu0 %v4984_v46, %s4260_s22 }
 0x523   : > { %2160 = vrot.lane.b32.xlu0 %v4988_v50, %s4260_s22  ;;  %s431_s22 = sand.u32 1, %s4245_s26  }
 0x524   : > { %s432_s17 = scalar_lea.vmem [#allocation2], %s431_s22  ;;  %s3164_s1 = scalar_lea.sflag [#allocation3], %s431_s22 }
 0x525   : > { %s3176_s0 = sshll.u32 %s432_s17, 4  ;;  %s5315_s0 = int_to_ptr.vmem [resolvable:$true] %s3176_s0 }
 0x526   : > { %s4191_s21 = scalar_lea.vmem %s5315_s0, 16 }
 0x527   : > { %2359 = vrot.lane.b32.xlu0 %v4988_v50, %s4261_s24  ;;  %p4192_p11 = scmp.ne.s32.totalorder %s5315_s0, %s4191_s21 }
 0x529   : > { %p4193_p12 = pnand %p4192_p11, %p4375_p5 }
 0x52b   : > { %p4194_p13 = pneg %p4193_p12 }
 0x536   : > { %2063 = vadd.xlane.f32.xlu1 %v2062_v21 }
 0x547   : > { %4113 = vrot.lane.b32.xlu1 %v4999_v58, %s4261_s24 }
 0x54b   : > { %2357 = vrot.lane.b32.xlu1 %v4984_v46, %s4261_s24 }
 0x559   : > { %v1470_v30 = vpop.xlane.xlu1 %1469 }
 0x55a   : > { %4139 = vrcp.f32 %v1470_v30 }
 0x55d   : > { %v1473_v22 = vpop.xlane.xlu0 %1472  ;;  %v1761_v31 = vpop.permute.xlu1 %1760 }
 0x561   : > { %v1586_v23 = vpop.xlane.xlu0 %1585 }
 0x562   : > { %4141 = vrcp.f32 %v1586_v23 }
 0x564   : > { %v4140_v33 = vpop.eup %4139 }
 0x565   : > { %v4109_v24 = vpop.permute.xlu0 %4108  ;;  %v1476_v40 = vmul.f32 %v4140_v33, %v4128_v55 }
 0x566   : > { %v4111_v25 = vunpack.i.h.bf16 %v4109_v24  ;;  %v4110_v26 = vunpack.i.l.bf16 %v4109_v24 }
 0x568   : > { %v3924_v29 = vpack.c.bf16 %v4111_v25, %v4110_v26 }
 0x56a   : > { %3926 = vmatprep.subr.msk.bf16.mxu0 %vm4995_vm4, %v3924_v29 }
 0x56c   : > { %v4142_v34 = vpop.eup %4141 }
 0x56d   : > { %v1590_v39 = vmul.f32 %v4142_v34, %v4132_v61 }
 0x58e   : > { %v1583_v32 = vpop.xlane.xlu1 %1582 }
 0x58f   : > { %4143 = vrcp.f32 %v1583_v32 }
 0x590   : > { %4145 = vrcp.f32 %v1473_v22 }
 0x596   : > { %v2067_v45 = vpop.xlane.xlu0 %2066 }
 0x597   : > { %4147 = vrcp.f32 %v2067_v45 }
 0x599   : > { %v4144_v35 = vpop.eup %4143 }
 0x59a   : > { %v1589_v38 = vmul.f32 %v4144_v35, %v4134_v7  ;;  %v4146_v43 = vpop.eup %4145  ;;  %v2159_v55 = vpop.permute.xlu0 %2158 }
 0x59b   : > { %v1477_v44 = vmul.f32 %v4146_v43, %v5059_v59 }
 0x59c   : > { %3528 = vmatprep.mubr.msk.f32.mxu1 %vm1454_vm9, %v1589_v38 }
 0x59d   : > { %3529 = vmatmul.mubr.msk.f32.vlgmr.msra.gmra.mrb[16].mxu1 %vm1454_vm9, %v1590_v39 }
 0x59e   : > { %3899 = vmatpush3.bf16.msk.msra.mxu1 %vm5023_vm7, %v4990_v51  ;;  %3535 = vmatprep.mubr.msk.f32.mxu1 %vm1454_vm9, %v1476_v40  ;;  %v1763_v51 = vpop.permute.xlu1 %1762  ;;  %v2161_v56 = vpop.permute.xlu0 %2160 }
 0x59f   : > { %3902 = vmatprep.subr.msk.bf16.mxu1 %vm4995_vm4, %v3900_v42 }
 0x5a1   : > { %v4148_v48 = vpop.eup %4147 }
 0x5a2   : > { %v2071_v54 = vmul.f32 %v4148_v48, %v5068_v12  ;;  %v2360_v60 = vpop.permute.xlu0 %2359 }
 0x5a5   : > { %3536 = vmatmul.mubr.msk.f32.vlgmr.msra.gmra.mrb[16].mxu1 %vm1454_vm9, %v1477_v44 }
 0x5a6   : > { %3542 = vmatprep.mubr.msk.f32.mxu1 %vm1366_vm3, %v1761_v31 }
 0x5a7   : > { %3905 = vmatpush3.bf16.xpose.msk.msra.mxu1 %vm4995_vm4, %v3900_v42 }
 0x5a8   : > { %3908 = vmatprep.subr.msk.bf16.mxu1 %vm5023_vm7, %v5012_v2 }
 0x5ae   : > { %3543 = vmatmul.mubr.msk.f32.vlgmr.msra.gmra.mrb[18].mxu1 %vm1366_vm3, %v1763_v51 }
 0x5af   : > { %3911 = vmatpush3.bf16.msk.msra.mxu1 %vm5023_vm7, %v5012_v2 }
 0x5b0   : > { %3932 = vmatprep.subr.msk.bf16.mxu1 %vm5023_vm7, %v5014_v3 }
 0x5c3   : > { %v2064_v47 = vpop.xlane.xlu1 %2063 }
 0x5c4   : > { %4149 = vrcp.f32 %v2064_v47 }
 0x5c7   : > { %v4114_v28 = vpop.permute.xlu1 %4113 }
 0x5c8   : > { %v4116_v49 = vunpack.i.h.bf16 %v4114_v28  ;;  %v4115_v52 = vunpack.i.l.bf16 %v4114_v28 }
 0x5ca   : > { %v3936_v2 = vpack.c.bf16 %v4116_v49, %v4115_v52 }
 0x5cb   : > { %v2358_v59 = vpop.permute.xlu1 %2357 }
 0x5ce   : > { %v4150_v41 = vpop.eup %4149 }
 0x5cf   : > { %v2070_v53 = vmul.f32 %v4150_v41, %v4138_v20 }
 0x5d1   : > { %3563 = vmatprep.mubr.msk.f32.mxu0 %vm1454_vm9, %v2070_v53 }
 0x5d2   : > { %3564 = vmatmul.mubr.msk.f32.vlgmr.msra.gmra.mrb[30].mxu0 %vm1454_vm9, %v2071_v54 }
 0x5d3   : > { %3929 = vmatpush3.bf16.xpose.msk.msra.mxu0 %vm4995_vm4, %v3924_v29  ;;  %3570 = vmatprep.mubr.msk.f32.mxu0 %vm1366_vm3, %v2159_v55 }
 0x5d4   : > { %3938 = vmatprep.subr.msk.bf16.mxu0 %vm4995_vm4, %v3936_v2 }
 0x5da   : > { %3571 = vmatmul.mubr.msk.f32.vlgmr.msra.gmra.mrb[32].mxu0 %vm1366_vm3, %v2161_v56 }
 0x5db   : > { %3941 = vmatpush3.bf16.xpose.msk.msra.mxu0 %vm4995_vm4, %v3936_v2  ;;  %3584 = vmatprep.mubr.msk.f32.mxu0 %vm1366_vm3, %v2358_v59 }
 0x5e2   : > { %3585 = vmatmul.mubr.msk.f32.vlgmr.msra.gmra.mrb[34].mxu0 %vm1366_vm3, %v2360_v60 }
 0x681   : > { %v3544_v61 = vpop.f32.mrb[18].mxu1 }
 0x682   : > { %v1842_v62 = vpop.f32.mrb[19].mxu1  ;;  %v1854_v63 = vsel %vm1458_vm8, %v3544_v61, -inf }
 0x683   : > { %1855 = vmax.xlane.f32.xlu0 %v1854_v63  ;;  %v1851_v0 = vsel %vm1454_vm9, %v1842_v62, -inf }
 0x684   : > { %1852 = vmax.xlane.f32.xlu1 %v1851_v0 }
 0x6a5   : > { %v5120_v1 = vpop.f32.mrb[30].mxu0 }
 0x6a6   : > { %v5122_v4 = vpop.f32.mrb[31].mxu0 }
 0x6ad   : > { %v3572_v5 = vpop.f32.mrb[32].mxu0 }
 0x6ae   : > { %v2240_v7 = vpop.f32.mrb[33].mxu0  ;;  %v2252_v10 = vsel %vm1458_vm8, %v3572_v5, -inf }
 0x6af   : > { %2253 = vmax.xlane.f32.xlu1 %v2252_v10  ;;  %v2249_v12 = vsel %vm1454_vm9, %v2240_v7, -inf }
 0x6b0   : > { %2250 = vmax.xlane.f32.xlu0 %v2249_v12 }
 0x6b5   : > { %v3586_v13 = vpop.f32.mrb[34].mxu0 }
 0x6b6   : > { %v2439_v15 = vpop.f32.mrb[35].mxu0  ;;  %v2451_v17 = vsel %vm1458_vm8, %v3586_v13, -inf }
 0x6b7   : > { %2452 = vmax.xlane.f32.xlu1 %v2451_v17  ;;  %v2448_v18 = vsel %vm1454_vm9, %v2439_v15, -inf }
 0x6b8   : > { %2449 = vmax.xlane.f32.xlu0 %v2448_v18 }
 0x710   : > { %v1856_v19 = vpop.xlane.xlu0 %1855 }
 0x711   : > { %v1858_v20 = vsub.f32 %v3544_v61, %v1856_v19  ;;  %v1853_v21 = vpop.xlane.xlu1 %1852 }
 0x712   : > { %v1857_v22 = vsub.f32 %v1842_v62, %v1853_v21 }
 0x713   : > { %v1861_v23 = vmul.f32 1.442695, %v1858_v20 }
 0x714   : > { %v1859_v24 = vmul.f32 1.442695, %v1857_v22 }
 0x715   : > { %4151 = vpow2.f32 %v1861_v23 }
 0x716   : > { %4153 = vpow2.f32 %v1859_v24 }
 0x71f   : > { %v4152_v25 = vpop.eup %4151 }
 0x720   : > { %v4154_v26 = vpop.eup %4153  ;;  %v1866_v29 = vsel %vm1458_vm8, %v4152_v25, 0.0 }
 0x721   : > { %1867 = vadd.xlane.f32.xlu1 %v1866_v29  ;;  %v1863_v30 = vsel %vm1454_vm9, %v4154_v26, 0.0 }
 0x722   : > { %1864 = vadd.xlane.f32.xlu0 %v1863_v30 }
 0x73c   : > { %v2254_v31 = vpop.xlane.xlu1 %2253 }
 0x73d   : > { %v2256_v32 = vsub.f32 %v3572_v5, %v2254_v31  ;;  %v2251_v33 = vpop.xlane.xlu0 %2250 }
 0x73e   : > { %v2255_v34 = vsub.f32 %v2240_v7, %v2251_v33 }
 0x73f   : > { %v2259_v35 = vmul.f32 1.442695, %v2256_v32 }
 0x740   : > { %v2257_v36 = vmul.f32 1.442695, %v2255_v34 }
 0x741   : > { %4155 = vpow2.f32 %v2259_v35 }
 0x742   : > { %4157 = vpow2.f32 %v2257_v36 }
 0x744   : > { %v2453_v37 = vpop.xlane.xlu1 %2452 }
 0x745   : > { %v2455_v38 = vsub.f32 %v3586_v13, %v2453_v37  ;;  %v2450_v39 = vpop.xlane.xlu0 %2449 }
 0x746   : > { %v2454_v40 = vsub.f32 %v2439_v15, %v2450_v39 }
 0x747   : > { %v2458_v42 = vmul.f32 1.442695, %v2455_v38 }
 0x748   : > { %v2456_v43 = vmul.f32 1.442695, %v2454_v40 }
 0x749   : > { %4159 = vpow2.f32 %v2458_v42 }
 0x74a   : > { %4161 = vpow2.f32 %v2456_v43 }
 0x74b   : > { %v4156_v44 = vpop.eup %4155 }
 0x74c   : > { %v4158_v51 = vpop.eup %4157  ;;  %v2264_v45 = vsel %vm1458_vm8, %v4156_v44, 0.0 }
 0x74d   : > { %2265 = vadd.xlane.f32.xlu1 %v2264_v45  ;;  %v2261_v47 = vsel %vm1454_vm9, %v4158_v51, 0.0 }
 0x74e   : > { %2262 = vadd.xlane.f32.xlu0 %v2261_v47 }
 0x753   : > { %v4160_v28 = vpop.eup %4159 }
 0x754   : > { %v4162_v48 = vpop.eup %4161  ;;  %v2463_v41 = vsel %vm1458_vm8, %v4160_v28, 0.0 }
 0x755   : > { %2464 = vadd.xlane.f32.xlu1 %v2463_v41  ;;  %v2460_v49 = vsel %vm1454_vm9, %v4162_v48, 0.0 }
 0x756   : > { %2461 = vadd.xlane.f32.xlu0 %v2460_v49 }
 0x766   : > { %4123 = vrot.lane.b32.xlu1 %v4999_v58, %s4262_s30 }
 0x76a   : > { %2556 = vrot.lane.b32.xlu1 %v4984_v46, %s4263_s23 }
 0x76c   : > { %4118 = vrot.lane.b32.xlu0 %v4999_v58, %s4263_s23 }
 0x76e   : > { %2755 = vrot.lane.b32.xlu1 %v4984_v46, %s4262_s30 }
 0x770   : > { %2558 = vrot.lane.b32.xlu0 %v4988_v50, %s4263_s23  ;;  %s3318_s23 = sshll.u32 %s4358_s29, 4  ;;  %s4266_s29 = smov [#allocation2]  }
 0x771   : > { %s5313_s20 = scalar_lea.hbm %s5368_s13, %s3318_s23  ;;  %s4195_s2 = sshll.u32 %s4266_s29, 4  ;;  %s4196_s2 = int_to_ptr.vmem [resolvable:$false] %s4195_s2 }
 0x772   : > { %s4197_s24 = scalar_lea.vmem %s4196_s2, 32  ;;  %p4198_p0 = scmp.lt.s32.totalorder %s5315_s0, %s4196_s2 }
 0x773   : > { %p4199_p1 = scmp.lt.s32.totalorder %s4197_s24, %s4191_s21 }
 0x774   : > { %2757 = vrot.lane.b32.xlu0 %v4988_v50, %s4262_s30 }
 0x775   : > { %p4200_p2 = por %p4199_p1, %p4198_p0 }
 0x777   : > { %p4201_p3 = pnand %p4200_p2, %p4194_p13 }
 0x7ae   : > { %v1868_v52 = vpop.xlane.xlu1 %1867 }
 0x7af   : > { %4163 = vrcp.f32 %v1868_v52  ;;  %v1865_v53 = vpop.xlane.xlu0 %1864 }
 0x7b0   : > { %4165 = vrcp.f32 %v1865_v53 }
 0x7b9   : > { %v4164_v54 = vpop.eup %4163 }
 0x7ba   : > { %v4166_v55 = vpop.eup %4165  ;;  %v1872_v56 = vmul.f32 %v4164_v54, %v4152_v25 }
 0x7bb   : > { %v1871_v2 = vmul.f32 %v4166_v55, %v4154_v26  ;;  %v2965_v55 = vld [vmem:[%s5364_s9] sm:$0xff] }
 0x7bd   : > { %3549 = vmatprep.mubr.msk.f32.mxu1 %vm1454_vm9, %v1871_v2  ;;  %v2966_v2 = vld [vmem:[%s5364_s9 + $0x8] sm:$0xff] }
 0x7be   : > { %3550 = vmatmul.mubr.msk.f32.vlgmr.msra.gmra.mrb[16].mxu1 %vm1454_vm9, %v1872_v56  ;;  %v2967_v56 = vld [vmem:[%s5364_s9 + $0x10] sm:$0xff] }
 0x7bf   : > { %3935 = vmatpush3.bf16.msk.msra.mxu1 %vm5023_vm7, %v5014_v3 }
 0x7c0   : > { %3944 = vmatprep.subr.msk.bf16.mxu1 %vm5023_vm7, %v5016_v8 }
 0x7da   : > { %v2266_v46 = vpop.xlane.xlu1 %2265 }
 0x7db   : > { %4167 = vrcp.f32 %v2266_v46  ;;  %v2263_v50 = vpop.xlane.xlu0 %2262  ;;  %v3972_v46 = vpack.c.bf16 %v2966_v2, %v2965_v55  ;;  %v3084_v55 = vld [vmem:[%s5366_s11 + $0x50] sm:$0xff]  ;;  %v3085_v2 = vld [vmem:[%s5366_s11 + $0x58] sm:$0xff] }
 0x7dc   : > { %4169 = vrcp.f32 %v2263_v50  ;;  %v2968_v50 = vld [vmem:[%s5364_s9 + $0x18] sm:$0xff] }
 0x7e2   : > { %v2465_v58 = vpop.xlane.xlu1 %2464 }
 0x7e3   : > { %4171 = vrcp.f32 %v2465_v58  ;;  %v2462_v59 = vpop.xlane.xlu0 %2461  ;;  %v3976_v58 = vpack.c.bf16 %v2968_v50, %v2967_v56  ;;  %v4020_v56 = vpack.c.bf16 %v3085_v2, %v3084_v55  ;;  %v3087_v50 = vld [vmem:[%s5366_s11 + $0x68] sm:$0xff] }
 0x7e4   : > { %4173 = vrcp.f32 %v2462_v59  ;;  %v2969_v59 = vld [vmem:[%s5364_s9 + $0x20] sm:$0xff] }
 0x7e5   : > { %v4168_v60 = vpop.eup %4167 }
 0x7e6   : > { %v4170_v61 = vpop.eup %4169  ;;  %v4124_v62 = vpop.permute.xlu1 %4123  ;;  %v2270_v3 = vmul.f32 %v4168_v60, %v4156_v44  ;;  %v2970_v60 = vld [vmem:[%s5364_s9 + $0x28] sm:$0xff] }
 0x7e7   : > { %v4126_v63 = vunpack.i.h.bf16 %v4124_v62  ;;  %v4125_v0 = vunpack.i.l.bf16 %v4124_v62  ;;  %v4119_v5 = vpop.permute.xlu0 %4118  ;;  %v2269_v7 = vmul.f32 %v4170_v61, %v4158_v51  ;;  %v3980_v61 = vpack.c.bf16 %v2970_v60, %v2969_v59  ;;  %v2971_v62 = vld [vmem:[%s5364_s9 + $0x30] sm:$0xff]  ;;  %v3089_v60 = vld [vmem:[%s5366_s11 + $0x78] sm:$0xff] }
 0x7e8   : > { %v4121_v10 = vunpack.i.h.bf16 %v4119_v5  ;;  %v4120_v12 = vunpack.i.l.bf16 %v4119_v5  ;;  %v2973_v5 = vld [vmem:[%s5364_s9 + $0x40] sm:$0xff]  ;;  %v3088_v59 = vld [vmem:[%s5366_s11 + $0x70] sm:$0xff] }
 0x7e9   : > { %v3960_v13 = vpack.c.bf16 %v4126_v63, %v4125_v0  ;;  %3577 = vmatprep.mubr.msk.f32.mxu1 %vm1454_vm9, %v2269_v7  ;;  %v2972_v63 = vld [vmem:[%s5364_s9 + $0x38] sm:$0xff]  ;;  %v2974_v7 = vld [vmem:[%s5364_s9 + $0x48] sm:$0xff] }
 0x7ea   : > { %v3948_v15 = vpack.c.bf16 %v4121_v10, %v4120_v12  ;;  %v2557_v17 = vpop.permute.xlu1 %2556  ;;  %3578 = vmatmul.mubr.msk.f32.vlgmr.msra.gmra.mrb[20].mxu1 %vm1454_vm9, %v2270_v3  ;;  %v3984_v0 = vpack.c.bf16 %v2972_v63, %v2971_v62  ;;  %v3988_v3 = vpack.c.bf16 %v2974_v7, %v2973_v5  ;;  %v2975_v10 = vld [vmem:[%s5364_s9 + $0x50] sm:$0xff]  ;;  %v2976_v12 = vld [vmem:[%s5364_s9 + $0x58] sm:$0xff]  ;;  %v3317_v62 = vld [vmem:[%s5365_s10] ss:$0 sm:$0xff] }
 0x7eb   : > { %3947 = vmatpush3.bf16.msk.msra.mxu1 %vm5023_vm7, %v5016_v8  ;;  %3962 = vmatprep.subr.msk.bf16.mxu0 %vm4995_vm4, %v3960_v13  ;;  %v2559_v18 = vpop.permute.xlu0 %2558 }
 0x7ec   : > { %3950 = vmatprep.subr.msk.bf16.mxu1 %vm4995_vm4, %v3948_v15  ;;  %3965 = vmatpush3.bf16.xpose.msk.msra.mxu0 %vm4995_vm4, %v3960_v13  ;;  %v3992_v13 = vpack.c.bf16 %v2976_v12, %v2975_v10 }
 0x7ed   : > { %v4172_v19 = vpop.eup %4171  ;;  %3973 = vmatprep.subr.bf16.mxu0 %v3972_v46 }
 0x7ee   : > { %v4174_v20 = vpop.eup %4173  ;;  %v2756_v21 = vpop.permute.xlu1 %2755  ;;  %v2469_v23 = vmul.f32 %v4172_v19, %v4160_v28 }
 0x7ef   : > { %3612 = vmatprep.mubr.msk.f32.mxu0 %vm1366_vm3, %v2756_v21  ;;  %v2468_v22 = vmul.f32 %v4174_v20, %v4162_v48  ;;  %v2758_v8 = vpop.permute.xlu0 %2757 }
 0x7f1   : > { %3591 = vmatprep.mubr.msk.f32.mxu1 %vm1454_vm9, %v2468_v22 }
 0x7f2   : > { %3592 = vmatmul.mubr.msk.f32.vlgmr.msra.gmra.mrb[20].mxu1 %vm1454_vm9, %v2469_v23 }
 0x7f3   : > { %3598 = vmatprep.mubr.msk.f32.mxu1 %vm1366_vm3, %v2557_v17  ;;  %3613 = vmatmul.mubr.msk.f32.vlgmr.msra.gmra.mrb[36].mxu0 %vm1366_vm3, %v2758_v8 }
 0x7f4   : > { %3953 = vmatpush3.bf16.xpose.msk.msra.mxu1 %vm4995_vm4, %v3948_v15  ;;  %3975 = vmatpush3.bf16.msra.mxu0 %v3972_v46  ;;  %v3086_v46 = vld [vmem:[%s5366_s11 + $0x60] sm:$0xff] }
 0x7f5   : > { %3956 = vmatprep.subr.msk.bf16.mxu1 %vm5023_vm7, %v5018_v14  ;;  %3977 = vmatprep.subr.bf16.mxu0 %v3976_v58 }
 0x7f8   : > { %3979 = vmatpush3.bf16.msra.mxu0 %v3976_v58  ;;  %v4023_v58 = vpack.c.bf16 %v3087_v50, %v3086_v46 }
 0x7f9   : > { %3981 = vmatprep.subr.bf16.mxu0 %v3980_v61 }
 0x7fb   : > { %3599 = vmatmul.mubr.msk.f32.vlgmr.msra.gmra.mrb[22].mxu1 %vm1366_vm3, %v2559_v18 }
 0x7fc   : > { %3959 = vmatpush3.bf16.msk.msra.mxu1 %vm5023_vm7, %v5018_v14  ;;  %3983 = vmatpush3.bf16.msra.mxu0 %v3980_v61  ;;  %v4026_v61 = vpack.c.bf16 %v3089_v60, %v3088_v59 }
 0x7fd   : > { %3968 = vmatprep.subr.msk.bf16.mxu1 %vm5023_vm7, %v5020_v16  ;;  %3985 = vmatprep.subr.bf16.mxu0 %v3984_v0 }
 0x800   : > { %3987 = vmatpush3.bf16.msra.mxu0 %v3984_v0 }
 0x801   : > { %3989 = vmatprep.subr.bf16.mxu0 %v3988_v3 }
 0x804   : > { %3991 = vmatpush3.bf16.msra.mxu0 %v3988_v3 }
 0x805   : > { %3993 = vmatprep.subr.bf16.mxu0 %v3992_v13 }
 0x808   : > { %3995 = vmatpush3.bf16.msra.mxu0 %v3992_v13 }
 0x891   : > { %v3551_v24 = vpop.f32.mrb[16].mxu1 }
 0x892   : > { %v5177_v25 = vadd.f32 %v5120_v1, %v3551_v24  ;;  %v1948_v57 = vpop.f32.mrb[17].mxu1 }
 0x893   : > { %v5180_v26 = vadd.f32 %v5122_v4, %v1948_v57 }
 0x8c6   : > { %v3614_v29 = vpop.f32.mrb[36].mxu0 }
 0x8c7   : > { %v2837_v30 = vpop.f32.mrb[37].mxu0  ;;  %v2849_v1 = vsel %vm1458_vm8, %v3614_v29, -inf }
 0x8c8   : > { %v2846_v34 = vsel %vm1454_vm9, %v2837_v30, -inf }
 0x8ce   : > { %v3600_v31 = vpop.f32.mrb[22].mxu1 }
 0x8cf   : > { %v2638_v32 = vpop.f32.mrb[23].mxu1  ;;  %v2650_v33 = vsel %vm1458_vm8, %v3600_v31, -inf }
 0x8d0   : > { %2651 = vmax.xlane.f32.xlu0 %v2650_v33  ;;  %v2647_v14 = vsel %vm1454_vm9, %v2638_v32, -inf }
 0x8d1   : > { %2648 = vmax.xlane.f32.xlu1 %v2647_v14  ;;  %v3074_v14 = vld [vmem:[%s5366_s11] sm:$0xff] }
 0x8d4   : > { %2847 = vmax.xlane.f32.xlu0 %v2846_v34  ;;  %v3075_v34 = vld [vmem:[%s5366_s11 + $0x8] sm:$0xff] }
 0x8d5   : > { %2850 = vmax.xlane.f32.xlu1 %v2849_v1  ;;  %v3076_v1 = vld [vmem:[%s5366_s11 + $0x10] sm:$0xff] }
 0x95d   : > { %v2652_v35 = vpop.xlane.xlu0 %2651 }
 0x95e   : > { %v2654_v36 = vsub.f32 %v3600_v31, %v2652_v35  ;;  %v2649_v4 = vpop.xlane.xlu1 %2648  ;;  %v2978_v31 = vld [vmem:[%s5364_s9 + $0x68] sm:$0xff]  ;;  %v4264_v35 = vmov 0.0|0.0  }
 0x95f   : > { %v2653_v37 = vsub.f32 %v2638_v32, %v2649_v4  ;;  %v3077_v4 = vld [vmem:[%s5366_s11 + $0x18] sm:$0xff] }
 0x960   : > { %v2657_v38 = vmul.f32 1.442695, %v2654_v36  ;;  %v4005_v36 = vpack.c.bf16 %v3075_v34, %v3074_v14 }
 0x961   : > { %v2655_v39 = vmul.f32 1.442695, %v2653_v37  ;;  %v2848_v40 = vpop.xlane.xlu0 %2847  ;;  %v4008_v37 = vpack.c.bf16 %v3077_v4, %v3076_v1 }
 0x962   : > { %4175 = vpow2.f32 %v2657_v38  ;;  %v2852_v42 = vsub.f32 %v2837_v30, %v2848_v40  ;;  %v2851_v43 = vpop.xlane.xlu1 %2850  ;;  %v2977_v30 = vld [vmem:[%s5364_s9 + $0x60] sm:$0xff] }
 0x963   : > { %4177 = vpow2.f32 %v2655_v39  ;;  %v2853_v44 = vsub.f32 %v3614_v29, %v2851_v43  ;;  %v3996_v32 = vpack.c.bf16 %v2978_v31, %v2977_v30  ;;  %v3078_v38 = vld [vmem:[%s5366_s11 + $0x20] sm:$0xff]  ;;  %v3079_v39 = vld [vmem:[%s5366_s11 + $0x28] sm:$0xff] }
 0x964   : > { %v2854_v51 = vmul.f32 1.442695, %v2852_v42  ;;  %v4011_v40 = vpack.c.bf16 %v3079_v39, %v3078_v38  ;;  %v3316_v43 = vld [vmem:[%s5363_s8] ss:$0 sm:$0xff] }
 0x965   : > { %v2856_v45 = vmul.f32 1.442695, %v2853_v44  ;;  %3997 = vmatprep.subr.bf16.mxu0 %v3996_v32 }
 0x966   : > { %4179 = vpow2.f32 %v2854_v51  ;;  %3999 = vmatpush3.bf16.msra.mxu0 %v3996_v32 }
 0x967   : > { %4181 = vpow2.f32 %v2856_v45 }
 0x96c   : > { %v4176_v47 = vpop.eup %4175 }
 0x96d   : > { %v4178_v28 = vpop.eup %4177  ;;  %v2662_v48 = vsel %vm1458_vm8, %v4176_v47, 0.0 }
 0x96e   : > { %2663 = vadd.xlane.f32.xlu1 %v2662_v48  ;;  %v2659_v41 = vsel %vm1454_vm9, %v4178_v28, 0.0  ;;  %v805_v48 = vmax.f32 %v4681_v11, 0.0  ;;  %v3083_v11 = vld [vmem:[%s5366_s11 + $0x48] sm:$0xff] }
 0x96f   : > { %2660 = vadd.xlane.f32.xlu0 %v2659_v41 }
 0x970   : > { %v4180_v49 = vpop.eup %4179 }
 0x971   : > { %v4182_v52 = vpop.eup %4181  ;;  %v2858_v53 = vsel %vm1454_vm9, %v4180_v49, 0.0 }
 0x972   : > { %v2861_v54 = vsel %vm1458_vm8, %v4182_v52, 0.0 }
 0x973   : > { %2859 = vadd.xlane.f32.xlu0 %v2858_v53  ;;  %2862 = vadd.xlane.f32.xlu1 %v2861_v54  ;;  %v3080_v53 = vld [vmem:[%s5366_s11 + $0x30] sm:$0xff] }
 0x9fb   : > { %v2664_v15 = vpop.xlane.xlu1 %2663 }
 0x9fc   : > { %4183 = vrcp.f32 %v2664_v15  ;;  %v2661_v17 = vpop.xlane.xlu0 %2660 }
 0x9fd   : > { %4185 = vrcp.f32 %v2661_v17 }
 0xa00   : > { %v2860_v18 = vpop.xlane.xlu0 %2859  ;;  %v2863_v19 = vpop.xlane.xlu1 %2862 }
 0xa01   : > { %4187 = vrcp.f32 %v2860_v18 }
 0xa02   : > { %4189 = vrcp.f32 %v2863_v19 }
 0xa06   : > { %v4184_v20 = vpop.eup %4183 }
 0xa07   : > { %v4186_v21 = vpop.eup %4185  ;;  %v2668_v23 = vmul.f32 %v4184_v20, %v4176_v47  ;;  %v806_v47 = vmax.f32 %v4679_v9, 0.0  ;;  %v3082_v9 = vld [vmem:[%s5366_s11 + $0x40] sm:$0xff] }
 0xa08   : > { %v2667_v22 = vmul.f32 %v4186_v21, %v4178_v28 }
 0xa0a   : > { %3605 = vmatprep.mubr.msk.f32.mxu1 %vm1454_vm9, %v2667_v22  ;;  %v3090_v22 = vld [vmem:[%s5367_s12] sm:$0x1] }
 0xa0b   : > { %v4188_v8 = vpop.eup %4187  ;;  %3606 = vmatmul.mubr.msk.f32.vlgmr.msra.gmra.mrb[20].mxu1 %vm1454_vm9, %v2668_v23 }
 0xa0c   : > { %3971 = vmatpush3.bf16.msk.msra.mxu1 %vm5023_vm7, %v5020_v16  ;;  %v2866_v24 = vmul.f32 %v4188_v8, %v4180_v49  ;;  %v4190_v57 = vpop.eup %4189  ;;  %v2979_v16 = vld [vmem:[%s5364_s9 + $0x70] sm:$0xff] }
 0xa0d   : > { %v2867_v29 = vmul.f32 %v4190_v57, %v4182_v52  ;;  %v4000_v33 = vpack.c.bf16 %v2980_v27, %v2979_v16  ;;  %4004 = vmatprep.subr.bf16.mxu1 %v4264_v35 }
 0xa0e   : > { %3619 = vmatprep.mubr.msk.f32.mxu1 %vm1454_vm9, %v2866_v24 }
 0xa0f   : > { %4001 = vmatprep.subr.bf16.mxu0 %v4000_v33 }
 0xa10   : > { %4003 = vmatpush3.bf16.msra.mxu0 %v4000_v33 }
 0xa13   : > { %3620 = vmatmul.mubr.msk.f32.vlgmr.msra.gmra.mrb[20].mxu1 %vm1454_vm9, %v2867_v29 }
 0xa14   : > { %4006 = vmatpush3.bf16.msra.mxu1 %v4005_v36  ;;  %3689 = vmatprep.mubr.msk.f32.mxu1 %vm4265_vm10, %v4255_v6 }
 0xa15   : > { %4007 = vmatprep.subr.bf16.mxu1 %v4264_v35 }
 0xa18   : > { %4009 = vmatpush3.bf16.msra.mxu1 %v4008_v37 }
 0xa19   : > { %4010 = vmatprep.subr.bf16.mxu1 %v4264_v35 }
 0xa1c   : > { %4012 = vmatpush3.bf16.msra.mxu1 %v4011_v40 }
 0xa1d   : > { %4013 = vmatprep.subr.bf16.mxu1 %v4264_v35 }
 0xae6   : > { %v3621_v42 = vpop.f32.mrb[20].mxu1 }
 0xae7   : > { %v4029_v44 = vadd.f32 %v5177_v25, %v3621_v42  ;;  %v2943_v51 = vpop.f32.mrb[21].mxu1  ;;  %v3081_v25 = vld [vmem:[%s5366_s11 + $0x38] sm:$0xff] }
 0xae8   : > { %v4031_v45 = vadd.f32 %v5180_v26, %v2943_v51  ;;  %v4014_v54 = vpack.c.bf16 %v3081_v25, %v3080_v53  ;;  %v4017_v26 = vpack.c.bf16 %v3083_v11, %v3082_v9 }
 0xae9   : > { %v2962_v28 = vadd.f32 %v4029_v44, %v3316_v43 }
 0xaea   : > { %v2961_v41 = vadd.f32 %v4031_v45, %v3316_v43  ;;  %4015 = vmatpush3.bf16.msra.mxu1 %v4014_v54 }
 0xaeb   : > { %v2964_v49 = vadd.f32 %v2962_v28, %v806_v47  ;;  %4016 = vmatprep.subr.bf16.mxu1 %v4264_v35 }
 0xaec   : > { %v2963_v52 = vadd.f32 %v2961_v41, %v805_v48 }
 0xaee   : > { %3654 = vmatprep.mubr.f32.mxu0 %v2963_v52  ;;  %4018 = vmatpush3.bf16.msra.mxu1 %v4017_v26 }
 0xaef   : > { %3655 = vmatmul.mubr.f32.vlgmr.msra.gmra.mrb[38].mxu0 %v2964_v49  ;;  %4019 = vmatprep.subr.bf16.mxu1 %v4264_v35 }
 0xaf2   : > { %4021 = vmatpush3.bf16.msra.mxu1 %v4020_v56 }
 0xaf3   : > { %4022 = vmatprep.subr.bf16.mxu1 %v4264_v35 }
 0xaf6   : > { %4024 = vmatpush3.bf16.msra.mxu1 %v4023_v58 }
 0xaf7   : > { %4025 = vmatprep.subr.bf16.mxu1 %v4264_v35 }
 0xafa   : > { %4027 = vmatpush3.bf16.msra.mxu1 %v4026_v61 }
 0xbc2   : > { %v3656_v63 = vpop.f32.mrb[38].mxu0 }
 0xbc3   : > { %v3060_v0 = vadd.f32 %v3656_v63, %v3317_v62  ;;  %v3054_v5 = vpop.f32.mrb[39].mxu0 }
 0xbc4   : > { %v3055_v7 = vadd.f32 %v3317_v62, %v3054_v5 }
 0xbc5   : > { %v3064_v3 = vmax.f32 %v3060_v0, 0.0 }
 0xbc6   : > { %v3063_v10 = vmax.f32 %v3055_v7, 0.0 }
 0xbc7   : > { %v3065_v12 = vsel %vm1597_vm5, %v3064_v3, 0.0 }
 0xbc8   : > { %v3066_v13 = vadd.f32 %v3065_v12, %v3063_v10 }
 0xbca   : > { %v3067_v15 = vrot.slane %v3066_v13, 4 }
 0xbcc   : > { %v3068_v17 = vadd.f32 %v3067_v15, %v3066_v13 }
 0xbce   : > { %v3069_v18 = vrot.slane %v3068_v17, 2 }
 0xbd0   : > { %v3070_v6 = vadd.f32 %v3069_v18, %v3068_v17 }
 0xbd2   : > { %v3071_v19 = vrot.slane %v3070_v6, 1 }
 0xbd4   : > { %v3072_v20 = vadd.f32 %v3071_v19, %v3070_v6 }
 0xbd6   : > { %v3073_v21 = vmul.f32 0.1, %v3072_v20 }
 0xbd8   : > { %3690 = vmatmul.mubr.f32.vlgmr.msra.gmra.mrb[24].mxu1 %v3073_v21 }
 0xcab   : > { %v3157_v23 = vpop.f32.mrb[24].mxu1 }
 0xcac   : > { %v3158_v8 = vadd.f32 %v3157_v23, %v3090_v22  ;;  %v3691_v24 = vpop.f32.mrb[25].mxu1 }
 0xcae   : > { %3162 = vst.msk [vmem:[%s432_s17] sm:$0x1] %vm3161_vm11, %v3158_v8 }
 0xcaf   : > { %4204 = shalt.err (!%p4201_p3)
}
 0xcb0   : > { %s4205_s22 = scalar_lea.hbm %s5313_s20, 16  ;;  %s4209_s17 = scalar_lea.hbm %s5368_s13, 32 }
 0xcb1   : > { %p4206_p4 = scmp.ne.s32.totalorder %s5313_s20, %s4205_s22  ;;  %p4210_p9 = scmp.lt.u32.totalorder %s5313_s20, %s5368_s13 }
 0xcb2   : > { %p4211_p10 = scmp.lt.u32.totalorder %s4209_s17, %s4205_s22  ;;  %p4213_p12 = scmp.lt.u32.totalorder %s4205_s22, %s5313_s20 }
 0xcb3   : > { %p4207_p7 = pnand %p4206_p4, %p4375_p5 }
 0xcb4   : > { %p4212_p11 = por %p4211_p10, %p4210_p9 }
 0xcb5   : > { %p4208_p8 = pneg %p4207_p7 }
 0xcb6   : > { %p4214_p13 = por %p4213_p12, %p4212_p11 }
 0xcb8   : > { %p4215_p0 = pnand %p4214_p13, %p4208_p8 }
 0xcba   : > { %4218 = shalt.err (!%p4215_p0)
}
 0xcbb   : > { %4042 = dma.vmem_to_hbm [thread:$0]  (%p4375_p5), %s5315_s0, 16, %s5313_s20, %s3164_s1  }
 0xcbc PF: > { %p4048_p1 = scmp.ge.s32.totalorder %s4253_s28, 2  ;;  %s3188_s21 = sand.u32 1, %s4241_s25  }
 0xcbd   : > { %s3189_s29 = scalar_lea.sflag [#allocation3], %s3188_s21 }
 0xcbe   : > { %p4045_p2 = pnand %p4048_p1, %p4379_p6 }
 0xcc0   : > { %4236 = dma.done.wait (!%p4045_p2), %s3189_s29, 16  }
 0xcc1   : > { %4238 = vsyncadd (!%p4045_p2), %s3189_s29, 4294967280  ;;  %s5382_s2 = sld [smem:[#allocation5_spill]]  ;;  %p23_p3 = scmp.ge.s32.totalorder %s4362_s14, 4  }
 0xcc2   : > { %s5383_s25 = smov %s4245_s26  ;;  %s5384_s26 = smov %s4249_s27 }
 0xcc3   : > { %s5386_s28 = smov %s4362_s14  ;;  %25 = sbr.rel (!%p23_p3) target bundleno = 7 (0x7), region = 107 }
 0xcc7   : > { %s5385_s27 = smov %s5382_s2 }
 0xcca   :  { %3193 = vsyncpa [#allocation3], 1 }
 0xccb   :  { %3195 = vsyncpa [#allocation3 + $0x1], 1 }

</bundles_post_ra>
